<compile_context>
chip_gen: v7x
topology: tpu7x:2x2x1
jax: 0.10.0
libtpu: 0.0.40
codegen_flags: <defaults>
</compile_context>

<pallas_src>
import functools

import numpy as np
import jax
import jax.numpy as jnp
from jax import lax
from jax.experimental import pallas as pl


# ----------------------------------------------------------------------------
# Scaled-down mBERT configuration
# ----------------------------------------------------------------------------
VOCAB = 128
TYPE_VOCAB = 2
MAX_POS = 16
HIDDEN = 32
NUM_HEADS = 4
HEAD_DIM = HIDDEN // NUM_HEADS
INTERMEDIATE = 64
NUM_LAYERS = 2
NUM_CLASSES = 2
LN_EPS = 1e-12
NEG_BIAS = -10000.0  # HF additive-mask constant


# ----------------------------------------------------------------------------
# Fused forward kernel (embeddings -> encoder -> pooler -> classification head)
# ----------------------------------------------------------------------------
def _mbert_fused_kernel(
    ids_ref, mask_ref,                      # dynamic inputs
    tile_sel_ref, block_bias_ref, head_mask_ref,  # static structure matrices
    word_emb_ref, pos_emb_ref, type_emb_ref,
    emb_ln_g_ref, emb_ln_b_ref,
    qkv_w_ref, qkv_b_ref, ao_w_ref, ao_b_ref,
    ln1_g_ref, ln1_b_ref,
    inter_w_ref, inter_b_ref, out_w_ref, out_b_ref,
    ln2_g_ref, ln2_b_ref,
    pooler_w_ref, pooler_b_ref,
    ff1_w_ref, ff1_b_ref, ff2_w_ref, ff2_b_ref,
    logits_ref,
    *, batch_size, seq_len, num_layers, num_heads, ln_eps):
    f32 = jnp.float32
    B, S, NH, L = batch_size, seq_len, num_heads, num_layers
    BS = B * S
    vocab, H = word_emb_ref.shape
    Dh = H // NH
    N = NH * BS                               # rows ordered (head, batch, seq)
    scale = f32(Dh ** -0.5)
    NEG = f32(NEG_BIAS)

    def layer_norm(x, g, b):
        mu = jnp.mean(x, axis=-1, keepdims=True)
        var = jnp.mean(jnp.square(x - mu), axis=-1, keepdims=True)
        return (x - mu) * lax.rsqrt(var + f32(ln_eps)) * g + b

    def gelu(x):  # exact erf GELU, as in HF BERT
        return f32(0.5) * x * (f32(1.0) + lax.erf(x * f32(0.7071067811865476)))

    # ---- embeddings: gather-free one-hot matmul + tiled positions + segment-0 type ----
    vocab_col = lax.broadcasted_iota(jnp.int32, (BS, vocab), 1)
    onehot = jnp.where(vocab_col == ids_ref[...], f32(1.0), f32(0.0))       # (BS, VOCAB)
    tok = jnp.dot(onehot, word_emb_ref[...], preferred_element_type=f32)    # (BS, H)
    pos = jnp.concatenate([pos_emb_ref[0:S, :]] * B, axis=0)                # (BS, H)
    # token_type_ids default to 0 (HF behaviour when only input_ids/attention_mask given)
    emb = tok + pos + type_emb_ref[0:1, :]
    hidden = layer_norm(emb, emb_ln_g_ref[...], emb_ln_b_ref[...])          # (BS, H)

    # ---- attention bias, built ONCE: block-diagonal structure + HF key-padding mask ----
    key_valid = jnp.dot(mask_ref[...], tile_sel_ref[...],
                        preferred_element_type=f32)                          # (1, N)
    attn_bias = block_bias_ref[...] + (f32(1.0) - key_valid) * NEG           # (N, N)
    head_mask = head_mask_ref[...]                                           # (N, H)

    # ---- encoder layers (statically unrolled; weights stay resident in VMEM) ----
    for l in range(L):
        # replicate rows per head: row (h, b, s) = hidden[b*S + s]
        hx = jnp.concatenate([hidden] * NH, axis=0)                          # (N, H)
        q = (jnp.dot(hx, qkv_w_ref[3 * l + 0], preferred_element_type=f32)
             + qkv_b_ref[3 * l + 0]) * head_mask
        k = (jnp.dot(hx, qkv_w_ref[3 * l + 1], preferred_element_type=f32)
             + qkv_b_ref[3 * l + 1]) * head_mask
        v = (jnp.dot(hx, qkv_w_ref[3 * l + 2], preferred_element_type=f32)
             + qkv_b_ref[3 * l + 2]) * head_mask
        # head-masked full-width contraction == per-head scores on the diagonal blocks;
        # off-block entries are killed by attn_bias (exp underflows to exactly 0).
        s = lax.dot_general(q, k, (((1,), (1,)), ((), ())),
                            preferred_element_type=f32) * scale + attn_bias  # (N, N)
        s = s - jnp.max(s, axis=-1, keepdims=True)
        p = jnp.exp(s)
        p = p / jnp.sum(p, axis=-1, keepdims=True)        # exact divide (tight accuracy)
        ctxp = jnp.dot(p, v, preferred_element_type=f32)                     # (N, H)
        # merge heads: each head's context occupies disjoint lane columns -> sum row blocks
        ctx = ctxp[0:BS, :]
        for h in range(1, NH):
            ctx = ctx + ctxp[h * BS:(h + 1) * BS, :]                         # (BS, H)
        attn_out = jnp.dot(ctx, ao_w_ref[l], preferred_element_type=f32) + ao_b_ref[l]
        hidden = layer_norm(attn_out + hidden, ln1_g_ref[l], ln1_b_ref[l])   # residual

        inter = gelu(jnp.dot(hidden, inter_w_ref[l], preferred_element_type=f32)
                     + inter_b_ref[l])
        ffn = jnp.dot(inter, out_w_ref[l], preferred_element_type=f32) + out_b_ref[l]
        hidden = layer_norm(ffn + hidden, ln2_g_ref[l], ln2_b_ref[l])        # residual

    # ---- BERT pooler on [CLS] rows (gather-free one-hot row selection) ----
    col = lax.broadcasted_iota(jnp.int32, (B, BS), 1)
    row = lax.broadcasted_iota(jnp.int32, (B, BS), 0)
    sel = jnp.where(col == row * S, f32(1.0), f32(0.0))                      # (B, BS)
    cls = jnp.dot(sel, hidden, preferred_element_type=f32)                   # (B, H)
    pooled = jnp.tanh(jnp.dot(cls, pooler_w_ref[...], preferred_element_type=f32)
                      + pooler_b_ref[...])

    # ---- ClassificationHead: ff2(dropout(ff1(pooled))); dropout is eval-mode no-op ----
    h1 = jnp.dot(pooled, ff1_w_ref[...], preferred_element_type=f32) + ff1_b_ref[...]
    logits = jnp.dot(h1, ff2_w_ref[...], preferred_element_type=f32) + ff2_b_ref[...]
    logits_ref[...] = logits.astype(logits_ref.dtype)


# ----------------------------------------------------------------------------
# Compile-time structure matrices (depend only on config, not on data)
# ----------------------------------------------------------------------------
def _structural_constants(B, S):
    BS, N, H, Dh = B * S, NUM_HEADS * B * S, HIDDEN, HEAD_DIM
    tok = np.arange(N) % BS                       # token index of each (h, b, s) row
    blk = np.arange(N) // S                       # (head, batch) block id of each row
    # (BS, N): tiles the flattened (1, BS) attention mask NH times along lanes via a matmul
    tile_sel = (tok[None, :] == np.arange(BS)[:, None]).astype(np.float32)
    # (N, N): 0 on same-(head,batch) blocks, NEG_BIAS elsewhere
    block_bias = np.where(blk[:, None] == blk[None, :], 0.0, NEG_BIAS).astype(np.float32)
    # (N, H): 1 where the row's head owns the column
    head_mask = ((np.arange(N)[:, None] // BS) ==
                 (np.arange(H)[None, :] // Dh)).astype(np.float32)
    return jnp.asarray(tile_sel), jnp.asarray(block_bias), jnp.asarray(head_mask)


# ----------------------------------------------------------------------------
# Deterministic synthetic parameters (stand-in for pretrained mBERT weights),
# packed in lane-dense layouts.
# ----------------------------------------------------------------------------
def init_params(key):
    def nrm(k, shape):
        return (0.02 * jax.random.normal(k, shape)).astype(jnp.float32)

    L, H, I, C = NUM_LAYERS, HIDDEN, INTERMEDIATE, NUM_CLASSES
    ks = iter(jax.random.split(key, 10))
    return {
        "word_emb": nrm(next(ks), (VOCAB, H)),
        "pos_emb": nrm(next(ks), (MAX_POS, H)),
        "type_emb": nrm(next(ks), (TYPE_VOCAB, H)),
        "emb_ln_g": jnp.ones((1, H), jnp.float32),
        "emb_ln_b": jnp.zeros((1, H), jnp.float32),
        # lane-dense Q/K/V weights: (L*3, H, H); head h = columns h*Dh:(h+1)*Dh
        "qkv_w": nrm(next(ks), (L * 3, H, H)),
        "qkv_b": jnp.zeros((L * 3, 1, H), jnp.float32),
        # attention output projection, rows head-major (h, d): (L, H, H)
        "ao_w": nrm(next(ks), (L, H, H)),
        "ao_b": jnp.zeros((L, 1, H), jnp.float32),
        "ln1_g": jnp.ones((L, 1, H), jnp.float32),
        "ln1_b": jnp.zeros((L, 1, H), jnp.float32),
        "inter_w": nrm(next(ks), (L, H, I)),
        "inter_b": jnp.zeros((L, 1, I), jnp.float32),
        "out_w": nrm(next(ks), (L, I, H)),
        "out_b": jnp.zeros((L, 1, H), jnp.float32),
        "ln2_g": jnp.ones((L, 1, H), jnp.float32),
        "ln2_b": jnp.zeros((L, 1, H), jnp.float32),
        "pooler_w": nrm(next(ks), (H, H)),
        "pooler_b": jnp.zeros((1, H), jnp.float32),
        "ff1_w": nrm(next(ks), (H, H // 2)),
        "ff1_b": jnp.zeros((1, H // 2), jnp.float32),
        "ff2_w": nrm(next(ks), (H // 2, C)),
        "ff2_b": jnp.zeros((1, C), jnp.float32),
    }


# ----------------------------------------------------------------------------
# Forward pass (matches MBERTClassifier.forward semantics)
# ----------------------------------------------------------------------------
def mbert_classifier_forward(params, batch):
    input_ids = batch["input_ids"].astype(jnp.int32)        # (B, S)
    attention_mask = batch["attention_mask"]                 # (B, S) {0, 1}
    B, S = input_ids.shape
    assert S <= MAX_POS, f"sequence length {S} exceeds max_position_embeddings {MAX_POS}"

    ids_col = input_ids.reshape(B * S, 1)                                   # (BS, 1) int32
    mask_row = attention_mask.astype(jnp.float32).reshape(1, B * S)         # (1, BS) f32
    tile_sel, block_bias, head_mask = _structural_constants(B, S)

    kernel = functools.partial(
        _mbert_fused_kernel,
        batch_size=B, seq_len=S,
        num_layers=NUM_LAYERS, num_heads=NUM_HEADS, ln_eps=LN_EPS)

    logits = pl.pallas_call(
        kernel,
        out_shape=jax.ShapeDtypeStruct((B, NUM_CLASSES), jnp.float32),
    )(ids_col, mask_row,
      tile_sel, block_bias, head_mask,
      params["word_emb"], params["pos_emb"], params["type_emb"],
      params["emb_ln_g"], params["emb_ln_b"],
      params["qkv_w"], params["qkv_b"], params["ao_w"], params["ao_b"],
      params["ln1_g"], params["ln1_b"],
      params["inter_w"], params["inter_b"], params["out_w"], params["out_b"],
      params["ln2_g"], params["ln2_b"],
      params["pooler_w"], params["pooler_b"],
      params["ff1_w"], params["ff1_b"], params["ff2_w"], params["ff2_b"])
    return {"logits": logits}


# ----------------------------------------------------------------------------
# Pure-JAX reference (for an in-script numerical sanity check)
# ----------------------------------------------------------------------------
def reference_forward(params, batch):
    input_ids = batch["input_ids"]
    mask = batch["attention_mask"].astype(jnp.float32)
    B, S = input_ids.shape
    L, H, NH, Dh = NUM_LAYERS, HIDDEN, NUM_HEADS, HEAD_DIM

    def ln(x, g, b):
        mu = x.mean(-1, keepdims=True)
        var = ((x - mu) ** 2).mean(-1, keepdims=True)
        return (x - mu) / jnp.sqrt(var + LN_EPS) * g + b

    tok = jnp.take(params["word_emb"], input_ids, axis=0)
    emb = tok + params["pos_emb"][:S][None] + params["type_emb"][0][None, None]
    hidden = ln(emb.reshape(B * S, H), params["emb_ln_g"], params["emb_ln_b"])
    amask = (1.0 - mask) * NEG_BIAS                                         # (B, S)

    def heads(t):
        return t.reshape(B, S, NH, Dh).transpose(0, 2, 1, 3)                # (B, NH, S, Dh)

    for l in range(L):
        x = hidden
        q = heads(x @ params["qkv_w"][3 * l + 0] + params["qkv_b"][3 * l + 0])
        k = heads(x @ params["qkv_w"][3 * l + 1] + params["qkv_b"][3 * l + 1])
        v = heads(x @ params["qkv_w"][3 * l + 2] + params["qkv_b"][3 * l + 2])
        s = jnp.einsum("bhqd,bhkd->bhqk", q, k) / jnp.sqrt(float(Dh)) + amask[:, None, None, :]
        p = jax.nn.softmax(s, axis=-1)
        ctx = jnp.einsum("bhqk,bhkd->bhqd", p, v).transpose(0, 2, 1, 3).reshape(B * S, H)
        attn = ctx @ params["ao_w"][l] + params["ao_b"][l]
        hidden = ln(attn + hidden, params["ln1_g"][l], params["ln1_b"][l])
        inter = hidden @ params["inter_w"][l] + params["inter_b"][l]
        inter = 0.5 * inter * (1.0 + lax.erf(inter * 0.7071067811865476))
        ffn = inter @ params["out_w"][l] + params["out_b"][l]
        hidden = ln(ffn + hidden, params["ln2_g"][l], params["ln2_b"][l])

    cls = hidden.reshape(B, S, H)[:, 0, :]
    pooled = jnp.tanh(cls @ params["pooler_w"] + params["pooler_b"])
    h1 = pooled @ params["ff1_w"] + params["ff1_b"]
    return h1 @ params["ff2_w"] + params["ff2_b"]


# ----------------------------------------------------------------------------
if __name__ == "__main__":
    key = jax.random.PRNGKey(0)
    k_params, k_ids = jax.random.split(key, 2)

    params = init_params(k_params)

    B, S = 2, 8
    input_ids = jax.random.randint(k_ids, (B, S), 0, VOCAB, dtype=jnp.int32)
    attention_mask = jnp.ones((B, S), dtype=jnp.int32).at[1, 6:].set(0)  # pad tail of sample 1
    batch = {"input_ids": input_ids, "attention_mask": attention_mask}

    out = mbert_classifier_forward(params, batch)
    logits = jax.block_until_ready(out["logits"])

    assert logits.shape == (B, NUM_CLASSES)
    assert bool(jnp.all(jnp.isfinite(logits)))

    # Numerical sanity check vs. pure-JAX reference.  Softmax is now exact (no approx
    # reciprocal); remaining slack only covers XLA-vs-MXU f32 matmul pass differences.
    with jax.default_matmul_precision("highest"):
        ref = reference_forward(params, batch)
    assert bool(jnp.allclose(logits, ref, rtol=5e-3, atol=2e-4)), (logits, ref)

    print("KERNEL_OK")
</pallas_src>

<mosaic_0001>
module attributes {stable_mosaic.version = 11 : i64} {
  func.func @_mbert_fused_kernel(%arg0: memref<16x1xi32, #tpu.memory_space<vmem>>, %arg1: memref<1x16xf32, #tpu.memory_space<vmem>>, %arg2: memref<16x64xf32, #tpu.memory_space<vmem>>, %arg3: memref<64x64xf32, #tpu.memory_space<vmem>>, %arg4: memref<64x32xf32, #tpu.memory_space<vmem>>, %arg5: memref<128x32xf32, #tpu.memory_space<vmem>>, %arg6: memref<16x32xf32, #tpu.memory_space<vmem>>, %arg7: memref<2x32xf32, #tpu.memory_space<vmem>>, %arg8: memref<1x32xf32, #tpu.memory_space<vmem>>, %arg9: memref<1x32xf32, #tpu.memory_space<vmem>>, %arg10: memref<6x32x32xf32, #tpu.memory_space<vmem>>, %arg11: memref<6x1x32xf32, #tpu.memory_space<vmem>>, %arg12: memref<2x32x32xf32, #tpu.memory_space<vmem>>, %arg13: memref<2x1x32xf32, #tpu.memory_space<vmem>>, %arg14: memref<2x1x32xf32, #tpu.memory_space<vmem>>, %arg15: memref<2x1x32xf32, #tpu.memory_space<vmem>>, %arg16: memref<2x32x64xf32, #tpu.memory_space<vmem>>, %arg17: memref<2x1x64xf32, #tpu.memory_space<vmem>>, %arg18: memref<2x64x32xf32, #tpu.memory_space<vmem>>, %arg19: memref<2x1x32xf32, #tpu.memory_space<vmem>>, %arg20: memref<2x1x32xf32, #tpu.memory_space<vmem>>, %arg21: memref<2x1x32xf32, #tpu.memory_space<vmem>>, %arg22: memref<32x32xf32, #tpu.memory_space<vmem>>, %arg23: memref<1x32xf32, #tpu.memory_space<vmem>>, %arg24: memref<32x16xf32, #tpu.memory_space<vmem>>, %arg25: memref<1x16xf32, #tpu.memory_space<vmem>>, %arg26: memref<16x2xf32, #tpu.memory_space<vmem>>, %arg27: memref<1x2xf32, #tpu.memory_space<vmem>>, %arg28: memref<2x2xf32, #tpu.memory_space<vmem>>) attributes {dimension_semantics = [], scalar_prefetch = 0 : i64, scratch_operands = 0 : i64, tpu.core_type = #tpu.core_type<tc>} {
    %0 = tpu.iota {dimensions = array<i32: 1>} : vector<16x128xi32>
    %c0 = arith.constant 0 : index
    %c0_0 = arith.constant 0 : index
    %1 = vector.load %arg0[%c0, %c0_0] : memref<16x1xi32, #tpu.memory_space<vmem>>, vector<16x1xi32>
    %2 = vector.broadcast %1 : vector<16x1xi32> to vector<16x128xi32>
    %3 = arith.cmpi eq, %0, %2 : vector<16x128xi32>
    %cst = arith.constant 1.000000e+00 : f32
    %cst_1 = arith.constant 0.000000e+00 : f32
    %4 = vector.broadcast %cst : f32 to vector<16x128xf32>
    %5 = vector.broadcast %cst_1 : f32 to vector<16x128xf32>
    %6 = arith.select %3, %4, %5 : vector<16x128xi1>, vector<16x128xf32>
    %c0_2 = arith.constant 0 : index
    %c0_3 = arith.constant 0 : index
    %7 = vector.load %arg5[%c0_2, %c0_3] : memref<128x32xf32, #tpu.memory_space<vmem>>, vector<128x32xf32>
    %cst_4 = arith.constant dense<0.000000e+00> : vector<16x32xf32>
    %8 = tpu.matmul %6, %7, %cst_4 {dimension_numbers = #tpu.dot_dimension_numbers<[1], [0], [0], [1], [0, 0, 1, 1], [], []>} : vector<16x128xf32>, vector<128x32xf32>, vector<16x32xf32> -> vector<16x32xf32>
    %c0_5 = arith.constant 0 : index
    %c0_6 = arith.constant 0 : index
    %9 = vector.load %arg6[%c0_5, %c0_6] : memref<16x32xf32, #tpu.memory_space<vmem>>, vector<8x32xf32>
    %10 = tpu.concatenate %9, %9 in 0 : vector<8x32xf32>, vector<8x32xf32> -> vector<16x32xf32>
    %11 = arith.addf %8, %10 : vector<16x32xf32>
    %c0_7 = arith.constant 0 : index
    %c0_8 = arith.constant 0 : index
    %12 = vector.load %arg7[%c0_7, %c0_8] : memref<2x32xf32, #tpu.memory_space<vmem>>, vector<1x32xf32>
    %13 = vector.broadcast %12 : vector<1x32xf32> to vector<16x32xf32>
    %14 = arith.addf %11, %13 : vector<16x32xf32>
    %c0_9 = arith.constant 0 : index
    %c0_10 = arith.constant 0 : index
    %15 = vector.load %arg8[%c0_9, %c0_10] : memref<1x32xf32, #tpu.memory_space<vmem>>, vector<1x32xf32>
    %c0_11 = arith.constant 0 : index
    %c0_12 = arith.constant 0 : index
    %16 = vector.load %arg9[%c0_11, %c0_12] : memref<1x32xf32, #tpu.memory_space<vmem>>, vector<1x32xf32>
    %cst_13 = arith.constant dense<0.000000e+00> : vector<16xf32>
    %17 = vector.multi_reduction <add>, %14, %cst_13 [1] : vector<16x32xf32> to vector<16xf32>
    %18 = vector.shape_cast %17 : vector<16xf32> to vector<16x1xf32>
    %cst_14 = arith.constant 3.200000e+01 : f32
    %19 = vector.broadcast %cst_14 : f32 to vector<16x1xf32>
    %20 = arith.divf %18, %19 : vector<16x1xf32>
    %21 = vector.broadcast %20 : vector<16x1xf32> to vector<16x32xf32>
    %22 = arith.subf %14, %21 : vector<16x32xf32>
    %23 = arith.mulf %22, %22 : vector<16x32xf32>
    %cst_15 = arith.constant dense<0.000000e+00> : vector<16xf32>
    %24 = vector.multi_reduction <add>, %23, %cst_15 [1] : vector<16x32xf32> to vector<16xf32>
    %25 = vector.shape_cast %24 : vector<16xf32> to vector<16x1xf32>
    %cst_16 = arith.constant 3.200000e+01 : f32
    %26 = vector.broadcast %cst_16 : f32 to vector<16x1xf32>
    %27 = arith.divf %25, %26 : vector<16x1xf32>
    %28 = vector.broadcast %20 : vector<16x1xf32> to vector<16x32xf32>
    %29 = arith.subf %14, %28 : vector<16x32xf32>
    %cst_17 = arith.constant 9.99999996E-13 : f32
    %30 = vector.broadcast %cst_17 : f32 to vector<16x1xf32>
    %31 = arith.addf %27, %30 : vector<16x1xf32>
    %32 = math.rsqrt %31 : vector<16x1xf32>
    %33 = vector.broadcast %32 : vector<16x1xf32> to vector<16x32xf32>
    %34 = arith.mulf %29, %33 : vector<16x32xf32>
    %35 = vector.broadcast %15 : vector<1x32xf32> to vector<16x32xf32>
    %36 = arith.mulf %34, %35 : vector<16x32xf32>
    %37 = vector.broadcast %16 : vector<1x32xf32> to vector<16x32xf32>
    %38 = arith.addf %36, %37 : vector<16x32xf32>
    %c0_18 = arith.constant 0 : index
    %c0_19 = arith.constant 0 : index
    %39 = vector.load %arg1[%c0_18, %c0_19] : memref<1x16xf32, #tpu.memory_space<vmem>>, vector<1x16xf32>
    %c0_20 = arith.constant 0 : index
    %c0_21 = arith.constant 0 : index
    %40 = vector.load %arg2[%c0_20, %c0_21] : memref<16x64xf32, #tpu.memory_space<vmem>>, vector<16x64xf32>
    %cst_22 = arith.constant dense<0.000000e+00> : vector<1x64xf32>
    %41 = tpu.matmul %39, %40, %cst_22 {dimension_numbers = #tpu.dot_dimension_numbers<[1], [0], [0], [1], [0, 0, 1, 1], [], []>} : vector<1x16xf32>, vector<16x64xf32>, vector<1x64xf32> -> vector<1x64xf32>
    %c0_23 = arith.constant 0 : index
    %c0_24 = arith.constant 0 : index
    %42 = vector.load %arg3[%c0_23, %c0_24] : memref<64x64xf32, #tpu.memory_space<vmem>>, vector<64x64xf32>
    %cst_25 = arith.constant 1.000000e+00 : f32
    %43 = vector.broadcast %cst_25 : f32 to vector<1x64xf32>
    %44 = arith.subf %43, %41 : vector<1x64xf32>
    %cst_26 = arith.constant -1.000000e+04 : f32
    %45 = vector.broadcast %cst_26 : f32 to vector<1x64xf32>
    %46 = arith.mulf %44, %45 : vector<1x64xf32>
    %47 = vector.broadcast %46 : vector<1x64xf32> to vector<64x64xf32>
    %48 = arith.addf %42, %47 : vector<64x64xf32>
    %c0_27 = arith.constant 0 : index
    %c0_28 = arith.constant 0 : index
    %49 = vector.load %arg4[%c0_27, %c0_28] : memref<64x32xf32, #tpu.memory_space<vmem>>, vector<64x32xf32>
    %50 = tpu.concatenate %38, %38, %38, %38 in 0 : vector<16x32xf32>, vector<16x32xf32>, vector<16x32xf32>, vector<16x32xf32> -> vector<64x32xf32>
    %c0_29 = arith.constant 0 : index
    %c0_30 = arith.constant 0 : index
    %c0_31 = arith.constant 0 : index
    %51 = vector.load %arg10[%c0_29, %c0_30, %c0_31] : memref<6x32x32xf32, #tpu.memory_space<vmem>>, vector<1x32x32xf32>
    %52 = vector.shape_cast %51 : vector<1x32x32xf32> to vector<32x32xf32>
    %cst_32 = arith.constant dense<0.000000e+00> : vector<64x32xf32>
    %53 = tpu.matmul %50, %52, %cst_32 {dimension_numbers = #tpu.dot_dimension_numbers<[1], [0], [0], [1], [0, 0, 1, 1], [], []>} : vector<64x32xf32>, vector<32x32xf32>, vector<64x32xf32> -> vector<64x32xf32>
    %c0_33 = arith.constant 0 : index
    %c0_34 = arith.constant 0 : index
    %c0_35 = arith.constant 0 : index
    %54 = vector.load %arg11[%c0_33, %c0_34, %c0_35] : memref<6x1x32xf32, #tpu.memory_space<vmem>>, vector<1x1x32xf32>
    %55 = vector.shape_cast %54 : vector<1x1x32xf32> to vector<1x32xf32>
    %56 = vector.broadcast %55 : vector<1x32xf32> to vector<64x32xf32>
    %57 = arith.addf %53, %56 : vector<64x32xf32>
    %58 = arith.mulf %57, %49 : vector<64x32xf32>
    %c1 = arith.constant 1 : index
    %c0_36 = arith.constant 0 : index
    %c0_37 = arith.constant 0 : index
    %59 = vector.load %arg10[%c1, %c0_36, %c0_37] : memref<6x32x32xf32, #tpu.memory_space<vmem>>, vector<1x32x32xf32>
    %60 = vector.shape_cast %59 : vector<1x32x32xf32> to vector<32x32xf32>
    %cst_38 = arith.constant dense<0.000000e+00> : vector<64x32xf32>
    %61 = tpu.matmul %50, %60, %cst_38 {dimension_numbers = #tpu.dot_dimension_numbers<[1], [0], [0], [1], [0, 0, 1, 1], [], []>} : vector<64x32xf32>, vector<32x32xf32>, vector<64x32xf32> -> vector<64x32xf32>
    %c1_39 = arith.constant 1 : index
    %c0_40 = arith.constant 0 : index
    %c0_41 = arith.constant 0 : index
    %62 = vector.load %arg11[%c1_39, %c0_40, %c0_41] : memref<6x1x32xf32, #tpu.memory_space<vmem>>, vector<1x1x32xf32>
    %63 = vector.shape_cast %62 : vector<1x1x32xf32> to vector<1x32xf32>
    %64 = vector.broadcast %63 : vector<1x32xf32> to vector<64x32xf32>
    %65 = arith.addf %61, %64 : vector<64x32xf32>
    %66 = arith.mulf %65, %49 : vector<64x32xf32>
    %c2 = arith.constant 2 : index
    %c0_42 = arith.constant 0 : index
    %c0_43 = arith.constant 0 : index
    %67 = vector.load %arg10[%c2, %c0_42, %c0_43] : memref<6x32x32xf32, #tpu.memory_space<vmem>>, vector<1x32x32xf32>
    %68 = vector.shape_cast %67 : vector<1x32x32xf32> to vector<32x32xf32>
    %cst_44 = arith.constant dense<0.000000e+00> : vector<64x32xf32>
    %69 = tpu.matmul %50, %68, %cst_44 {dimension_numbers = #tpu.dot_dimension_numbers<[1], [0], [0], [1], [0, 0, 1, 1], [], []>} : vector<64x32xf32>, vector<32x32xf32>, vector<64x32xf32> -> vector<64x32xf32>
    %c2_45 = arith.constant 2 : index
    %c0_46 = arith.constant 0 : index
    %c0_47 = arith.constant 0 : index
    %70 = vector.load %arg11[%c2_45, %c0_46, %c0_47] : memref<6x1x32xf32, #tpu.memory_space<vmem>>, vector<1x1x32xf32>
    %71 = vector.shape_cast %70 : vector<1x1x32xf32> to vector<1x32xf32>
    %72 = vector.broadcast %71 : vector<1x32xf32> to vector<64x32xf32>
    %73 = arith.addf %69, %72 : vector<64x32xf32>
    %74 = arith.mulf %73, %49 : vector<64x32xf32>
    %cst_48 = arith.constant dense<0.000000e+00> : vector<64x64xf32>
    %75 = tpu.matmul %58, %66, %cst_48 {dimension_numbers = #tpu.dot_dimension_numbers<[1], [1], [0], [0], [0, 0, 1, 0], [], []>} : vector<64x32xf32>, vector<64x32xf32>, vector<64x64xf32> -> vector<64x64xf32>
    %cst_49 = arith.constant 0.353553385 : f32
    %76 = vector.broadcast %cst_49 : f32 to vector<64x64xf32>
    %77 = arith.mulf %75, %76 : vector<64x64xf32>
    %78 = arith.addf %77, %48 : vector<64x64xf32>
    %cst_50 = arith.constant dense<0xFF800000> : vector<64xf32>
    %79 = vector.multi_reduction <maximumf>, %78, %cst_50 [1] : vector<64x64xf32> to vector<64xf32>
    %80 = vector.shape_cast %79 : vector<64xf32> to vector<64x1xf32>
    %81 = vector.broadcast %80 : vector<64x1xf32> to vector<64x64xf32>
    %82 = arith.subf %78, %81 : vector<64x64xf32>
    %83 = math.exp %82 : vector<64x64xf32>
    %cst_51 = arith.constant dense<0.000000e+00> : vector<64xf32>
    %84 = vector.multi_reduction <add>, %83, %cst_51 [1] : vector<64x64xf32> to vector<64xf32>
    %85 = vector.shape_cast %84 : vector<64xf32> to vector<64x1xf32>
    %86 = vector.broadcast %85 : vector<64x1xf32> to vector<64x64xf32>
    %87 = arith.divf %83, %86 : vector<64x64xf32>
    %cst_52 = arith.constant dense<0.000000e+00> : vector<64x32xf32>
    %88 = tpu.matmul %87, %74, %cst_52 {dimension_numbers = #tpu.dot_dimension_numbers<[1], [0], [0], [1], [0, 0, 1, 1], [], []>} : vector<64x64xf32>, vector<64x32xf32>, vector<64x32xf32> -> vector<64x32xf32>
    %89 = vector.extract_strided_slice %88 {offsets = [0, 0], sizes = [16, 32], strides = [1, 1]} : vector<64x32xf32> to vector<16x32xf32>
    %90 = vector.extract_strided_slice %88 {offsets = [16, 0], sizes = [16, 32], strides = [1, 1]} : vector<64x32xf32> to vector<16x32xf32>
    %91 = arith.addf %89, %90 : vector<16x32xf32>
    %92 = vector.extract_strided_slice %88 {offsets = [32, 0], sizes = [16, 32], strides = [1, 1]} : vector<64x32xf32> to vector<16x32xf32>
    %93 = arith.addf %91, %92 : vector<16x32xf32>
    %94 = vector.extract_strided_slice %88 {offsets = [48, 0], sizes = [16, 32], strides = [1, 1]} : vector<64x32xf32> to vector<16x32xf32>
    %95 = arith.addf %93, %94 : vector<16x32xf32>
    %c0_53 = arith.constant 0 : index
    %c0_54 = arith.constant 0 : index
    %c0_55 = arith.constant 0 : index
    %96 = vector.load %arg12[%c0_53, %c0_54, %c0_55] : memref<2x32x32xf32, #tpu.memory_space<vmem>>, vector<1x32x32xf32>
    %97 = vector.shape_cast %96 : vector<1x32x32xf32> to vector<32x32xf32>
    %cst_56 = arith.constant dense<0.000000e+00> : vector<16x32xf32>
    %98 = tpu.matmul %95, %97, %cst_56 {dimension_numbers = #tpu.dot_dimension_numbers<[1], [0], [0], [1], [0, 0, 1, 1], [], []>} : vector<16x32xf32>, vector<32x32xf32>, vector<16x32xf32> -> vector<16x32xf32>
    %c0_57 = arith.constant 0 : index
    %c0_58 = arith.constant 0 : index
    %c0_59 = arith.constant 0 : index
    %99 = vector.load %arg13[%c0_57, %c0_58, %c0_59] : memref<2x1x32xf32, #tpu.memory_space<vmem>>, vector<1x1x32xf32>
    %100 = vector.shape_cast %99 : vector<1x1x32xf32> to vector<1x32xf32>
    %101 = vector.broadcast %100 : vector<1x32xf32> to vector<16x32xf32>
    %102 = arith.addf %98, %101 : vector<16x32xf32>
    %103 = arith.addf %102, %38 : vector<16x32xf32>
    %c0_60 = arith.constant 0 : index
    %c0_61 = arith.constant 0 : index
    %c0_62 = arith.constant 0 : index
    %104 = vector.load %arg14[%c0_60, %c0_61, %c0_62] : memref<2x1x32xf32, #tpu.memory_space<vmem>>, vector<1x1x32xf32>
    %105 = vector.shape_cast %104 : vector<1x1x32xf32> to vector<1x32xf32>
    %c0_63 = arith.constant 0 : index
    %c0_64 = arith.constant 0 : index
    %c0_65 = arith.constant 0 : index
    %106 = vector.load %arg15[%c0_63, %c0_64, %c0_65] : memref<2x1x32xf32, #tpu.memory_space<vmem>>, vector<1x1x32xf32>
    %107 = vector.shape_cast %106 : vector<1x1x32xf32> to vector<1x32xf32>
    %cst_66 = arith.constant dense<0.000000e+00> : vector<16xf32>
    %108 = vector.multi_reduction <add>, %103, %cst_66 [1] : vector<16x32xf32> to vector<16xf32>
    %109 = vector.shape_cast %108 : vector<16xf32> to vector<16x1xf32>
    %cst_67 = arith.constant 3.200000e+01 : f32
    %110 = vector.broadcast %cst_67 : f32 to vector<16x1xf32>
    %111 = arith.divf %109, %110 : vector<16x1xf32>
    %112 = vector.broadcast %111 : vector<16x1xf32> to vector<16x32xf32>
    %113 = arith.subf %103, %112 : vector<16x32xf32>
    %114 = arith.mulf %113, %113 : vector<16x32xf32>
    %cst_68 = arith.constant dense<0.000000e+00> : vector<16xf32>
    %115 = vector.multi_reduction <add>, %114, %cst_68 [1] : vector<16x32xf32> to vector<16xf32>
    %116 = vector.shape_cast %115 : vector<16xf32> to vector<16x1xf32>
    %cst_69 = arith.constant 3.200000e+01 : f32
    %117 = vector.broadcast %cst_69 : f32 to vector<16x1xf32>
    %118 = arith.divf %116, %117 : vector<16x1xf32>
    %119 = vector.broadcast %111 : vector<16x1xf32> to vector<16x32xf32>
    %120 = arith.subf %103, %119 : vector<16x32xf32>
    %cst_70 = arith.constant 9.99999996E-13 : f32
    %121 = vector.broadcast %cst_70 : f32 to vector<16x1xf32>
    %122 = arith.addf %118, %121 : vector<16x1xf32>
    %123 = math.rsqrt %122 : vector<16x1xf32>
    %124 = vector.broadcast %123 : vector<16x1xf32> to vector<16x32xf32>
    %125 = arith.mulf %120, %124 : vector<16x32xf32>
    %126 = vector.broadcast %105 : vector<1x32xf32> to vector<16x32xf32>
    %127 = arith.mulf %125, %126 : vector<16x32xf32>
    %128 = vector.broadcast %107 : vector<1x32xf32> to vector<16x32xf32>
    %129 = arith.addf %127, %128 : vector<16x32xf32>
    %c0_71 = arith.constant 0 : index
    %c0_72 = arith.constant 0 : index
    %c0_73 = arith.constant 0 : index
    %130 = vector.load %arg16[%c0_71, %c0_72, %c0_73] : memref<2x32x64xf32, #tpu.memory_space<vmem>>, vector<1x32x64xf32>
    %131 = vector.shape_cast %130 : vector<1x32x64xf32> to vector<32x64xf32>
    %cst_74 = arith.constant dense<0.000000e+00> : vector<16x64xf32>
    %132 = tpu.matmul %129, %131, %cst_74 {dimension_numbers = #tpu.dot_dimension_numbers<[1], [0], [0], [1], [0, 0, 1, 1], [], []>} : vector<16x32xf32>, vector<32x64xf32>, vector<16x64xf32> -> vector<16x64xf32>
    %c0_75 = arith.constant 0 : index
    %c0_76 = arith.constant 0 : index
    %c0_77 = arith.constant 0 : index
    %133 = vector.load %arg17[%c0_75, %c0_76, %c0_77] : memref<2x1x64xf32, #tpu.memory_space<vmem>>, vector<1x1x64xf32>
    %134 = vector.shape_cast %133 : vector<1x1x64xf32> to vector<1x64xf32>
    %135 = vector.broadcast %134 : vector<1x64xf32> to vector<16x64xf32>
    %136 = arith.addf %132, %135 : vector<16x64xf32>
    %cst_78 = arith.constant 5.000000e-01 : f32
    %137 = vector.broadcast %cst_78 : f32 to vector<16x64xf32>
    %138 = arith.mulf %137, %136 : vector<16x64xf32>
    %cst_79 = arith.constant 0.707106769 : f32
    %139 = vector.broadcast %cst_79 : f32 to vector<16x64xf32>
    %140 = arith.mulf %136, %139 : vector<16x64xf32>
    %141 = math.erf %140 : vector<16x64xf32>
    %cst_80 = arith.constant 1.000000e+00 : f32
    %142 = vector.broadcast %cst_80 : f32 to vector<16x64xf32>
    %143 = arith.addf %142, %141 : vector<16x64xf32>
    %144 = arith.mulf %138, %143 : vector<16x64xf32>
    %c0_81 = arith.constant 0 : index
    %c0_82 = arith.constant 0 : index
    %c0_83 = arith.constant 0 : index
    %145 = vector.load %arg18[%c0_81, %c0_82, %c0_83] : memref<2x64x32xf32, #tpu.memory_space<vmem>>, vector<1x64x32xf32>
    %146 = vector.shape_cast %145 : vector<1x64x32xf32> to vector<64x32xf32>
    %cst_84 = arith.constant dense<0.000000e+00> : vector<16x32xf32>
    %147 = tpu.matmul %144, %146, %cst_84 {dimension_numbers = #tpu.dot_dimension_numbers<[1], [0], [0], [1], [0, 0, 1, 1], [], []>} : vector<16x64xf32>, vector<64x32xf32>, vector<16x32xf32> -> vector<16x32xf32>
    %c0_85 = arith.constant 0 : index
    %c0_86 = arith.constant 0 : index
    %c0_87 = arith.constant 0 : index
    %148 = vector.load %arg19[%c0_85, %c0_86, %c0_87] : memref<2x1x32xf32, #tpu.memory_space<vmem>>, vector<1x1x32xf32>
    %149 = vector.shape_cast %148 : vector<1x1x32xf32> to vector<1x32xf32>
    %150 = vector.broadcast %149 : vector<1x32xf32> to vector<16x32xf32>
    %151 = arith.addf %147, %150 : vector<16x32xf32>
    %152 = arith.addf %151, %129 : vector<16x32xf32>
    %c0_88 = arith.constant 0 : index
    %c0_89 = arith.constant 0 : index
    %c0_90 = arith.constant 0 : index
    %153 = vector.load %arg20[%c0_88, %c0_89, %c0_90] : memref<2x1x32xf32, #tpu.memory_space<vmem>>, vector<1x1x32xf32>
    %154 = vector.shape_cast %153 : vector<1x1x32xf32> to vector<1x32xf32>
    %c0_91 = arith.constant 0 : index
    %c0_92 = arith.constant 0 : index
    %c0_93 = arith.constant 0 : index
    %155 = vector.load %arg21[%c0_91, %c0_92, %c0_93] : memref<2x1x32xf32, #tpu.memory_space<vmem>>, vector<1x1x32xf32>
    %156 = vector.shape_cast %155 : vector<1x1x32xf32> to vector<1x32xf32>
    %cst_94 = arith.constant dense<0.000000e+00> : vector<16xf32>
    %157 = vector.multi_reduction <add>, %152, %cst_94 [1] : vector<16x32xf32> to vector<16xf32>
    %158 = vector.shape_cast %157 : vector<16xf32> to vector<16x1xf32>
    %cst_95 = arith.constant 3.200000e+01 : f32
    %159 = vector.broadcast %cst_95 : f32 to vector<16x1xf32>
    %160 = arith.divf %158, %159 : vector<16x1xf32>
    %161 = vector.broadcast %160 : vector<16x1xf32> to vector<16x32xf32>
    %162 = arith.subf %152, %161 : vector<16x32xf32>
    %163 = arith.mulf %162, %162 : vector<16x32xf32>
    %cst_96 = arith.constant dense<0.000000e+00> : vector<16xf32>
    %164 = vector.multi_reduction <add>, %163, %cst_96 [1] : vector<16x32xf32> to vector<16xf32>
    %165 = vector.shape_cast %164 : vector<16xf32> to vector<16x1xf32>
    %cst_97 = arith.constant 3.200000e+01 : f32
    %166 = vector.broadcast %cst_97 : f32 to vector<16x1xf32>
    %167 = arith.divf %165, %166 : vector<16x1xf32>
    %168 = vector.broadcast %160 : vector<16x1xf32> to vector<16x32xf32>
    %169 = arith.subf %152, %168 : vector<16x32xf32>
    %cst_98 = arith.constant 9.99999996E-13 : f32
    %170 = vector.broadcast %cst_98 : f32 to vector<16x1xf32>
    %171 = arith.addf %167, %170 : vector<16x1xf32>
    %172 = math.rsqrt %171 : vector<16x1xf32>
    %173 = vector.broadcast %172 : vector<16x1xf32> to vector<16x32xf32>
    %174 = arith.mulf %169, %173 : vector<16x32xf32>
    %175 = vector.broadcast %154 : vector<1x32xf32> to vector<16x32xf32>
    %176 = arith.mulf %174, %175 : vector<16x32xf32>
    %177 = vector.broadcast %156 : vector<1x32xf32> to vector<16x32xf32>
    %178 = arith.addf %176, %177 : vector<16x32xf32>
    %179 = tpu.concatenate %178, %178, %178, %178 in 0 : vector<16x32xf32>, vector<16x32xf32>, vector<16x32xf32>, vector<16x32xf32> -> vector<64x32xf32>
    %c3 = arith.constant 3 : index
    %c0_99 = arith.constant 0 : index
    %c0_100 = arith.constant 0 : index
    %180 = vector.load %arg10[%c3, %c0_99, %c0_100] : memref<6x32x32xf32, #tpu.memory_space<vmem>>, vector<1x32x32xf32>
    %181 = vector.shape_cast %180 : vector<1x32x32xf32> to vector<32x32xf32>
    %cst_101 = arith.constant dense<0.000000e+00> : vector<64x32xf32>
    %182 = tpu.matmul %179, %181, %cst_101 {dimension_numbers = #tpu.dot_dimension_numbers<[1], [0], [0], [1], [0, 0, 1, 1], [], []>} : vector<64x32xf32>, vector<32x32xf32>, vector<64x32xf32> -> vector<64x32xf32>
    %c3_102 = arith.constant 3 : index
    %c0_103 = arith.constant 0 : index
    %c0_104 = arith.constant 0 : index
    %183 = vector.load %arg11[%c3_102, %c0_103, %c0_104] : memref<6x1x32xf32, #tpu.memory_space<vmem>>, vector<1x1x32xf32>
    %184 = vector.shape_cast %183 : vector<1x1x32xf32> to vector<1x32xf32>
    %185 = vector.broadcast %184 : vector<1x32xf32> to vector<64x32xf32>
    %186 = arith.addf %182, %185 : vector<64x32xf32>
    %187 = arith.mulf %186, %49 : vector<64x32xf32>
    %c4 = arith.constant 4 : index
    %c0_105 = arith.constant 0 : index
    %c0_106 = arith.constant 0 : index
    %188 = vector.load %arg10[%c4, %c0_105, %c0_106] : memref<6x32x32xf32, #tpu.memory_space<vmem>>, vector<1x32x32xf32>
    %189 = vector.shape_cast %188 : vector<1x32x32xf32> to vector<32x32xf32>
    %cst_107 = arith.constant dense<0.000000e+00> : vector<64x32xf32>
    %190 = tpu.matmul %179, %189, %cst_107 {dimension_numbers = #tpu.dot_dimension_numbers<[1], [0], [0], [1], [0, 0, 1, 1], [], []>} : vector<64x32xf32>, vector<32x32xf32>, vector<64x32xf32> -> vector<64x32xf32>
    %c4_108 = arith.constant 4 : index
    %c0_109 = arith.constant 0 : index
    %c0_110 = arith.constant 0 : index
    %191 = vector.load %arg11[%c4_108, %c0_109, %c0_110] : memref<6x1x32xf32, #tpu.memory_space<vmem>>, vector<1x1x32xf32>
    %192 = vector.shape_cast %191 : vector<1x1x32xf32> to vector<1x32xf32>
    %193 = vector.broadcast %192 : vector<1x32xf32> to vector<64x32xf32>
    %194 = arith.addf %190, %193 : vector<64x32xf32>
    %195 = arith.mulf %194, %49 : vector<64x32xf32>
    %c5 = arith.constant 5 : index
    %c0_111 = arith.constant 0 : index
    %c0_112 = arith.constant 0 : index
    %196 = vector.load %arg10[%c5, %c0_111, %c0_112] : memref<6x32x32xf32, #tpu.memory_space<vmem>>, vector<1x32x32xf32>
    %197 = vector.shape_cast %196 : vector<1x32x32xf32> to vector<32x32xf32>
    %cst_113 = arith.constant dense<0.000000e+00> : vector<64x32xf32>
    %198 = tpu.matmul %179, %197, %cst_113 {dimension_numbers = #tpu.dot_dimension_numbers<[1], [0], [0], [1], [0, 0, 1, 1], [], []>} : vector<64x32xf32>, vector<32x32xf32>, vector<64x32xf32> -> vector<64x32xf32>
    %c5_114 = arith.constant 5 : index
    %c0_115 = arith.constant 0 : index
    %c0_116 = arith.constant 0 : index
    %199 = vector.load %arg11[%c5_114, %c0_115, %c0_116] : memref<6x1x32xf32, #tpu.memory_space<vmem>>, vector<1x1x32xf32>
    %200 = vector.shape_cast %199 : vector<1x1x32xf32> to vector<1x32xf32>
    %201 = vector.broadcast %200 : vector<1x32xf32> to vector<64x32xf32>
    %202 = arith.addf %198, %201 : vector<64x32xf32>
    %203 = arith.mulf %202, %49 : vector<64x32xf32>
    %cst_117 = arith.constant dense<0.000000e+00> : vector<64x64xf32>
    %204 = tpu.matmul %187, %195, %cst_117 {dimension_numbers = #tpu.dot_dimension_numbers<[1], [1], [0], [0], [0, 0, 1, 0], [], []>} : vector<64x32xf32>, vector<64x32xf32>, vector<64x64xf32> -> vector<64x64xf32>
    %cst_118 = arith.constant 0.353553385 : f32
    %205 = vector.broadcast %cst_118 : f32 to vector<64x64xf32>
    %206 = arith.mulf %204, %205 : vector<64x64xf32>
    %207 = arith.addf %206, %48 : vector<64x64xf32>
    %cst_119 = arith.constant dense<0xFF800000> : vector<64xf32>
    %208 = vector.multi_reduction <maximumf>, %207, %cst_119 [1] : vector<64x64xf32> to vector<64xf32>
    %209 = vector.shape_cast %208 : vector<64xf32> to vector<64x1xf32>
    %210 = vector.broadcast %209 : vector<64x1xf32> to vector<64x64xf32>
    %211 = arith.subf %207, %210 : vector<64x64xf32>
    %212 = math.exp %211 : vector<64x64xf32>
    %cst_120 = arith.constant dense<0.000000e+00> : vector<64xf32>
    %213 = vector.multi_reduction <add>, %212, %cst_120 [1] : vector<64x64xf32> to vector<64xf32>
    %214 = vector.shape_cast %213 : vector<64xf32> to vector<64x1xf32>
    %215 = vector.broadcast %214 : vector<64x1xf32> to vector<64x64xf32>
    %216 = arith.divf %212, %215 : vector<64x64xf32>
    %cst_121 = arith.constant dense<0.000000e+00> : vector<64x32xf32>
    %217 = tpu.matmul %216, %203, %cst_121 {dimension_numbers = #tpu.dot_dimension_numbers<[1], [0], [0], [1], [0, 0, 1, 1], [], []>} : vector<64x64xf32>, vector<64x32xf32>, vector<64x32xf32> -> vector<64x32xf32>
    %218 = vector.extract_strided_slice %217 {offsets = [0, 0], sizes = [16, 32], strides = [1, 1]} : vector<64x32xf32> to vector<16x32xf32>
    %219 = vector.extract_strided_slice %217 {offsets = [16, 0], sizes = [16, 32], strides = [1, 1]} : vector<64x32xf32> to vector<16x32xf32>
    %220 = arith.addf %218, %219 : vector<16x32xf32>
    %221 = vector.extract_strided_slice %217 {offsets = [32, 0], sizes = [16, 32], strides = [1, 1]} : vector<64x32xf32> to vector<16x32xf32>
    %222 = arith.addf %220, %221 : vector<16x32xf32>
    %223 = vector.extract_strided_slice %217 {offsets = [48, 0], sizes = [16, 32], strides = [1, 1]} : vector<64x32xf32> to vector<16x32xf32>
    %224 = arith.addf %222, %223 : vector<16x32xf32>
    %c1_122 = arith.constant 1 : index
    %c0_123 = arith.constant 0 : index
    %c0_124 = arith.constant 0 : index
    %225 = vector.load %arg12[%c1_122, %c0_123, %c0_124] : memref<2x32x32xf32, #tpu.memory_space<vmem>>, vector<1x32x32xf32>
    %226 = vector.shape_cast %225 : vector<1x32x32xf32> to vector<32x32xf32>
    %cst_125 = arith.constant dense<0.000000e+00> : vector<16x32xf32>
    %227 = tpu.matmul %224, %226, %cst_125 {dimension_numbers = #tpu.dot_dimension_numbers<[1], [0], [0], [1], [0, 0, 1, 1], [], []>} : vector<16x32xf32>, vector<32x32xf32>, vector<16x32xf32> -> vector<16x32xf32>
    %c1_126 = arith.constant 1 : index
    %c0_127 = arith.constant 0 : index
    %c0_128 = arith.constant 0 : index
    %228 = vector.load %arg13[%c1_126, %c0_127, %c0_128] : memref<2x1x32xf32, #tpu.memory_space<vmem>>, vector<1x1x32xf32>
    %229 = vector.shape_cast %228 : vector<1x1x32xf32> to vector<1x32xf32>
    %230 = vector.broadcast %229 : vector<1x32xf32> to vector<16x32xf32>
    %231 = arith.addf %227, %230 : vector<16x32xf32>
    %232 = arith.addf %231, %178 : vector<16x32xf32>
    %c1_129 = arith.constant 1 : index
    %c0_130 = arith.constant 0 : index
    %c0_131 = arith.constant 0 : index
    %233 = vector.load %arg14[%c1_129, %c0_130, %c0_131] : memref<2x1x32xf32, #tpu.memory_space<vmem>>, vector<1x1x32xf32>
    %234 = vector.shape_cast %233 : vector<1x1x32xf32> to vector<1x32xf32>
    %c1_132 = arith.constant 1 : index
    %c0_133 = arith.constant 0 : index
    %c0_134 = arith.constant 0 : index
    %235 = vector.load %arg15[%c1_132, %c0_133, %c0_134] : memref<2x1x32xf32, #tpu.memory_space<vmem>>, vector<1x1x32xf32>
    %236 = vector.shape_cast %235 : vector<1x1x32xf32> to vector<1x32xf32>
    %cst_135 = arith.constant dense<0.000000e+00> : vector<16xf32>
    %237 = vector.multi_reduction <add>, %232, %cst_135 [1] : vector<16x32xf32> to vector<16xf32>
    %238 = vector.shape_cast %237 : vector<16xf32> to vector<16x1xf32>
    %cst_136 = arith.constant 3.200000e+01 : f32
    %239 = vector.broadcast %cst_136 : f32 to vector<16x1xf32>
    %240 = arith.divf %238, %239 : vector<16x1xf32>
    %241 = vector.broadcast %240 : vector<16x1xf32> to vector<16x32xf32>
    %242 = arith.subf %232, %241 : vector<16x32xf32>
    %243 = arith.mulf %242, %242 : vector<16x32xf32>
    %cst_137 = arith.constant dense<0.000000e+00> : vector<16xf32>
    %244 = vector.multi_reduction <add>, %243, %cst_137 [1] : vector<16x32xf32> to vector<16xf32>
    %245 = vector.shape_cast %244 : vector<16xf32> to vector<16x1xf32>
    %cst_138 = arith.constant 3.200000e+01 : f32
    %246 = vector.broadcast %cst_138 : f32 to vector<16x1xf32>
    %247 = arith.divf %245, %246 : vector<16x1xf32>
    %248 = vector.broadcast %240 : vector<16x1xf32> to vector<16x32xf32>
    %249 = arith.subf %232, %248 : vector<16x32xf32>
    %cst_139 = arith.constant 9.99999996E-13 : f32
    %250 = vector.broadcast %cst_139 : f32 to vector<16x1xf32>
    %251 = arith.addf %247, %250 : vector<16x1xf32>
    %252 = math.rsqrt %251 : vector<16x1xf32>
    %253 = vector.broadcast %252 : vector<16x1xf32> to vector<16x32xf32>
    %254 = arith.mulf %249, %253 : vector<16x32xf32>
    %255 = vector.broadcast %234 : vector<1x32xf32> to vector<16x32xf32>
    %256 = arith.mulf %254, %255 : vector<16x32xf32>
    %257 = vector.broadcast %236 : vector<1x32xf32> to vector<16x32xf32>
    %258 = arith.addf %256, %257 : vector<16x32xf32>
    %c1_140 = arith.constant 1 : index
    %c0_141 = arith.constant 0 : index
    %c0_142 = arith.constant 0 : index
    %259 = vector.load %arg16[%c1_140, %c0_141, %c0_142] : memref<2x32x64xf32, #tpu.memory_space<vmem>>, vector<1x32x64xf32>
    %260 = vector.shape_cast %259 : vector<1x32x64xf32> to vector<32x64xf32>
    %cst_143 = arith.constant dense<0.000000e+00> : vector<16x64xf32>
    %261 = tpu.matmul %258, %260, %cst_143 {dimension_numbers = #tpu.dot_dimension_numbers<[1], [0], [0], [1], [0, 0, 1, 1], [], []>} : vector<16x32xf32>, vector<32x64xf32>, vector<16x64xf32> -> vector<16x64xf32>
    %c1_144 = arith.constant 1 : index
    %c0_145 = arith.constant 0 : index
    %c0_146 = arith.constant 0 : index
    %262 = vector.load %arg17[%c1_144, %c0_145, %c0_146] : memref<2x1x64xf32, #tpu.memory_space<vmem>>, vector<1x1x64xf32>
    %263 = vector.shape_cast %262 : vector<1x1x64xf32> to vector<1x64xf32>
    %264 = vector.broadcast %263 : vector<1x64xf32> to vector<16x64xf32>
    %265 = arith.addf %261, %264 : vector<16x64xf32>
    %cst_147 = arith.constant 5.000000e-01 : f32
    %266 = vector.broadcast %cst_147 : f32 to vector<16x64xf32>
    %267 = arith.mulf %266, %265 : vector<16x64xf32>
    %cst_148 = arith.constant 0.707106769 : f32
    %268 = vector.broadcast %cst_148 : f32 to vector<16x64xf32>
    %269 = arith.mulf %265, %268 : vector<16x64xf32>
    %270 = math.erf %269 : vector<16x64xf32>
    %cst_149 = arith.constant 1.000000e+00 : f32
    %271 = vector.broadcast %cst_149 : f32 to vector<16x64xf32>
    %272 = arith.addf %271, %270 : vector<16x64xf32>
    %273 = arith.mulf %267, %272 : vector<16x64xf32>
    %c1_150 = arith.constant 1 : index
    %c0_151 = arith.constant 0 : index
    %c0_152 = arith.constant 0 : index
    %274 = vector.load %arg18[%c1_150, %c0_151, %c0_152] : memref<2x64x32xf32, #tpu.memory_space<vmem>>, vector<1x64x32xf32>
    %275 = vector.shape_cast %274 : vector<1x64x32xf32> to vector<64x32xf32>
    %cst_153 = arith.constant dense<0.000000e+00> : vector<16x32xf32>
    %276 = tpu.matmul %273, %275, %cst_153 {dimension_numbers = #tpu.dot_dimension_numbers<[1], [0], [0], [1], [0, 0, 1, 1], [], []>} : vector<16x64xf32>, vector<64x32xf32>, vector<16x32xf32> -> vector<16x32xf32>
    %c1_154 = arith.constant 1 : index
    %c0_155 = arith.constant 0 : index
    %c0_156 = arith.constant 0 : index
    %277 = vector.load %arg19[%c1_154, %c0_155, %c0_156] : memref<2x1x32xf32, #tpu.memory_space<vmem>>, vector<1x1x32xf32>
    %278 = vector.shape_cast %277 : vector<1x1x32xf32> to vector<1x32xf32>
    %279 = vector.broadcast %278 : vector<1x32xf32> to vector<16x32xf32>
    %280 = arith.addf %276, %279 : vector<16x32xf32>
    %281 = arith.addf %280, %258 : vector<16x32xf32>
    %c1_157 = arith.constant 1 : index
    %c0_158 = arith.constant 0 : index
    %c0_159 = arith.constant 0 : index
    %282 = vector.load %arg20[%c1_157, %c0_158, %c0_159] : memref<2x1x32xf32, #tpu.memory_space<vmem>>, vector<1x1x32xf32>
    %283 = vector.shape_cast %282 : vector<1x1x32xf32> to vector<1x32xf32>
    %c1_160 = arith.constant 1 : index
    %c0_161 = arith.constant 0 : index
    %c0_162 = arith.constant 0 : index
    %284 = vector.load %arg21[%c1_160, %c0_161, %c0_162] : memref<2x1x32xf32, #tpu.memory_space<vmem>>, vector<1x1x32xf32>
    %285 = vector.shape_cast %284 : vector<1x1x32xf32> to vector<1x32xf32>
    %cst_163 = arith.constant dense<0.000000e+00> : vector<16xf32>
    %286 = vector.multi_reduction <add>, %281, %cst_163 [1] : vector<16x32xf32> to vector<16xf32>
    %287 = vector.shape_cast %286 : vector<16xf32> to vector<16x1xf32>
    %cst_164 = arith.constant 3.200000e+01 : f32
    %288 = vector.broadcast %cst_164 : f32 to vector<16x1xf32>
    %289 = arith.divf %287, %288 : vector<16x1xf32>
    %290 = vector.broadcast %289 : vector<16x1xf32> to vector<16x32xf32>
    %291 = arith.subf %281, %290 : vector<16x32xf32>
    %292 = arith.mulf %291, %291 : vector<16x32xf32>
    %cst_165 = arith.constant dense<0.000000e+00> : vector<16xf32>
    %293 = vector.multi_reduction <add>, %292, %cst_165 [1] : vector<16x32xf32> to vector<16xf32>
    %294 = vector.shape_cast %293 : vector<16xf32> to vector<16x1xf32>
    %cst_166 = arith.constant 3.200000e+01 : f32
    %295 = vector.broadcast %cst_166 : f32 to vector<16x1xf32>
    %296 = arith.divf %294, %295 : vector<16x1xf32>
    %297 = vector.broadcast %289 : vector<16x1xf32> to vector<16x32xf32>
    %298 = arith.subf %281, %297 : vector<16x32xf32>
    %cst_167 = arith.constant 9.99999996E-13 : f32
    %299 = vector.broadcast %cst_167 : f32 to vector<16x1xf32>
    %300 = arith.addf %296, %299 : vector<16x1xf32>
    %301 = math.rsqrt %300 : vector<16x1xf32>
    %302 = vector.broadcast %301 : vector<16x1xf32> to vector<16x32xf32>
    %303 = arith.mulf %298, %302 : vector<16x32xf32>
    %304 = vector.broadcast %283 : vector<1x32xf32> to vector<16x32xf32>
    %305 = arith.mulf %303, %304 : vector<16x32xf32>
    %306 = vector.broadcast %285 : vector<1x32xf32> to vector<16x32xf32>
    %307 = arith.addf %305, %306 : vector<16x32xf32>
    %308 = tpu.iota {dimensions = array<i32: 1>} : vector<2x16xi32>
    %309 = tpu.iota {dimensions = array<i32: 0>} : vector<2x16xi32>
    %c8_i32 = arith.constant 8 : i32
    %310 = vector.broadcast %c8_i32 : i32 to vector<2x16xi32>
    %311 = arith.muli %309, %310 : vector<2x16xi32>
    %312 = arith.cmpi eq, %308, %311 : vector<2x16xi32>
    %cst_168 = arith.constant 1.000000e+00 : f32
    %cst_169 = arith.constant 0.000000e+00 : f32
    %313 = vector.broadcast %cst_168 : f32 to vector<2x16xf32>
    %314 = vector.broadcast %cst_169 : f32 to vector<2x16xf32>
    %315 = arith.select %312, %313, %314 : vector<2x16xi1>, vector<2x16xf32>
    %cst_170 = arith.constant dense<0.000000e+00> : vector<2x32xf32>
    %316 = tpu.matmul %315, %307, %cst_170 {dimension_numbers = #tpu.dot_dimension_numbers<[1], [0], [0], [1], [0, 0, 1, 1], [], []>} : vector<2x16xf32>, vector<16x32xf32>, vector<2x32xf32> -> vector<2x32xf32>
    %c0_171 = arith.constant 0 : index
    %c0_172 = arith.constant 0 : index
    %317 = vector.load %arg22[%c0_171, %c0_172] : memref<32x32xf32, #tpu.memory_space<vmem>>, vector<32x32xf32>
    %cst_173 = arith.constant dense<0.000000e+00> : vector<2x32xf32>
    %318 = tpu.matmul %316, %317, %cst_173 {dimension_numbers = #tpu.dot_dimension_numbers<[1], [0], [0], [1], [0, 0, 1, 1], [], []>} : vector<2x32xf32>, vector<32x32xf32>, vector<2x32xf32> -> vector<2x32xf32>
    %c0_174 = arith.constant 0 : index
    %c0_175 = arith.constant 0 : index
    %319 = vector.load %arg23[%c0_174, %c0_175] : memref<1x32xf32, #tpu.memory_space<vmem>>, vector<1x32xf32>
    %320 = vector.broadcast %319 : vector<1x32xf32> to vector<2x32xf32>
    %321 = arith.addf %318, %320 : vector<2x32xf32>
    %322 = math.tanh %321 : vector<2x32xf32>
    %c0_176 = arith.constant 0 : index
    %c0_177 = arith.constant 0 : index
    %323 = vector.load %arg24[%c0_176, %c0_177] : memref<32x16xf32, #tpu.memory_space<vmem>>, vector<32x16xf32>
    %cst_178 = arith.constant dense<0.000000e+00> : vector<2x16xf32>
    %324 = tpu.matmul %322, %323, %cst_178 {dimension_numbers = #tpu.dot_dimension_numbers<[1], [0], [0], [1], [0, 0, 1, 1], [], []>} : vector<2x32xf32>, vector<32x16xf32>, vector<2x16xf32> -> vector<2x16xf32>
    %c0_179 = arith.constant 0 : index
    %c0_180 = arith.constant 0 : index
    %325 = vector.load %arg25[%c0_179, %c0_180] : memref<1x16xf32, #tpu.memory_space<vmem>>, vector<1x16xf32>
    %326 = vector.broadcast %325 : vector<1x16xf32> to vector<2x16xf32>
    %327 = arith.addf %324, %326 : vector<2x16xf32>
    %c0_181 = arith.constant 0 : index
    %c0_182 = arith.constant 0 : index
    %328 = vector.load %arg26[%c0_181, %c0_182] : memref<16x2xf32, #tpu.memory_space<vmem>>, vector<16x2xf32>
    %cst_183 = arith.constant dense<0.000000e+00> : vector<2x2xf32>
    %329 = tpu.matmul %327, %328, %cst_183 {dimension_numbers = #tpu.dot_dimension_numbers<[1], [0], [0], [1], [0, 0, 1, 1], [], []>} : vector<2x16xf32>, vector<16x2xf32>, vector<2x2xf32> -> vector<2x2xf32>
    %c0_184 = arith.constant 0 : index
    %c0_185 = arith.constant 0 : index
    %330 = vector.load %arg27[%c0_184, %c0_185] : memref<1x2xf32, #tpu.memory_space<vmem>>, vector<1x2xf32>
    %331 = vector.broadcast %330 : vector<1x2xf32> to vector<2x2xf32>
    %332 = arith.addf %329, %331 : vector<2x2xf32>
    %c0_186 = arith.constant 0 : index
    %c0_187 = arith.constant 0 : index
    %333 = vector.load %arg28[%c0_186, %c0_187] : memref<2x2xf32, #tpu.memory_space<vmem>>, vector<2x2xf32>
    tpu.vector_store %arg28[%c0_186, %c0_187], %332 {strides = array<i32>} : memref<2x2xf32, #tpu.memory_space<vmem>>, vector<2x2xf32>,
    return
  }
}

</mosaic_0001>

<bundles_post_ra>
// kernel: tpu_custom_call.1
= control target key start
LH: loop header
LB: loop body
LE: loop exit
PB: predicated region body
PF: predicated region fallthrough
CT: control target
= control target key end

     0   :  { %s5502_s0 = inlined_call_operand.vmem [shape: s32[16,1], index: 0, kind: input, shape index: {}]   ;;  %s5503_s1 = inlined_call_operand.hbm [shape: f32[1,16], index: 1, kind: input, shape index: {}]   ;;  %s5504_s2 = inlined_call_operand.hbm [shape: f32[16,64], index: 2, kind: input, shape index: {}]   ;;  %s5505_s3 = inlined_call_operand.vmem [shape: f32[64,64], index: 3, kind: input, shape index: {}]   ;;  %s5506_s4 = inlined_call_operand.vmem [shape: f32[64,32], index: 4, kind: input, shape index: {}]   ;;  %s5507_s5 = inlined_call_operand.vmem [shape: f32[128,32], index: 5, kind: input, shape index: {}]   ;;  %s5508_s6 = inlined_call_operand.hbm [shape: f32[16,32], index: 6, kind: input, shape index: {}]   ;;  %s5509_s7 = inlined_call_operand.hbm [shape: f32[2,32], index: 7, kind: input, shape index: {}]   ;;  %s5510_s8 = inlined_call_operand.hbm [shape: f32[1,32], index: 8, kind: input, shape index: {}]   ;;  %s5511_s9 = inlined_call_operand.hbm [shape: f32[1,32], index: 9, kind: input, shape index: {}]   ;;  %s5512_s10 = inlined_call_operand.vmem [shape: f32[6,32,32], index: 10, kind: input, shape index: {}]   ;;  %s5513_s11 = inlined_call_operand.vmem [shape: f32[6,1,32], index: 11, kind: input, shape index: {}]   ;;  %s5514_s12 = inlined_call_operand.vmem [shape: f32[2,32,32], index: 12, kind: input, shape index: {}]   ;;  %s5515_s13 = inlined_call_operand.vmem [shape: f32[2,1,32], index: 13, kind: input, shape index: {}]   ;;  %s5516_s14 = inlined_call_operand.vmem [shape: f32[2,1,32], index: 14, kind: input, shape index: {}]   ;;  %s5517_s15 = inlined_call_operand.vmem [shape: f32[2,1,32], index: 15, kind: input, shape index: {}]   ;;  %s5518_s16 = inlined_call_operand.vmem [shape: f32[2,32,64], index: 16, kind: input, shape index: {}]   ;;  %s5519_s17 = inlined_call_operand.vmem [shape: f32[2,1,64], index: 17, kind: input, shape index: {}]   ;;  %s5520_s18 = inlined_call_operand.vmem [shape: f32[2,64,32], index: 18, kind: input, shape index: {}]   ;;  %s5521_s19 = inlined_call_operand.vmem [shape: f32[2,1,32], index: 19, kind: input, shape index: {}]   ;;  %s5522_s20 = inlined_call_operand.vmem [shape: f32[2,1,32], index: 20, kind: input, shape index: {}]   ;;  %s5523_s21 = inlined_call_operand.vmem [shape: f32[2,1,32], index: 21, kind: input, shape index: {}]   ;;  %s5524_s22 = inlined_call_operand.vmem [shape: f32[32,32], index: 22, kind: input, shape index: {}]   ;;  %s5525_s23 = inlined_call_operand.vmem [shape: f32[1,32], index: 23, kind: input, shape index: {}]   ;;  %s5526_s24 = inlined_call_operand.vmem [shape: f32[32,16], index: 24, kind: input, shape index: {}]   ;;  %s5527_s25 = inlined_call_operand.vmem [shape: f32[1,16], index: 25, kind: input, shape index: {}]   ;;  %s5528_s26 = inlined_call_operand.vmem [shape: f32[16,2], index: 26, kind: input, shape index: {}]   ;;  %s5529_s27 = inlined_call_operand.vmem [shape: f32[1,2], index: 27, kind: input, shape index: {}]   ;;  %s5530_s28 = inlined_call_operand.hbm [shape: f32[2,2], index: 28, kind: output, shape index: {}]  }
   0x1   :  { %5545 = sst [smem:[#allocation19_spill]] %s5502_s0 }
   0x2   :  { %5546 = sst [smem:[#allocation20_spill]] %s5503_s1 }
   0x3   :  { %5547 = sst [smem:[#allocation21_spill]] %s5504_s2 }
   0x4   :  { %5548 = sst [smem:[#allocation22_spill]] %s5505_s3 }
   0x5   :  { %5549 = sst [smem:[#allocation23_spill]] %s5506_s4 }
   0x6   :  { %5550 = sst [smem:[#allocation24_spill]] %s5507_s5 }
   0x7   :  { %5551 = sst [smem:[#allocation25_spill]] %s5508_s6 }
   0x8   :  { %5552 = sst [smem:[#allocation26_spill]] %s5509_s7 }
   0x9   :  { %5553 = sst [smem:[#allocation27_spill]] %s5510_s8 }
   0xa   :  { %5554 = sst [smem:[#allocation28_spill]] %s5511_s9 }
   0xb   :  { %5555 = sst [smem:[#allocation29_spill]] %s5512_s10 }
   0xc   :  { %5556 = sst [smem:[#allocation30_spill]] %s5513_s11 }
   0xd   :  { %5557 = sst [smem:[#allocation31_spill]] %s5514_s12 }
   0xe   :  { %5558 = sst [smem:[#allocation32_spill]] %s5527_s25 }
   0xf   :  { %5559 = sst [smem:[#allocation33_spill]] %s5529_s27 }
  0x10   :  { %5560 = sst [smem:[#allocation34_spill]] %s5530_s28 }
  0x11   :  { %33 = vsyncpa [#allocation3], 0 }
  0x12   :  { %34 = vsyncpa [#allocation6], 0 }
  0x13   :  { %35 = vsyncpa [#allocation9], 0 }
  0x14   :  { %36 = vsyncpa [#allocation12], 0 }
  0x15   :  { %37 = vsyncpa [#allocation4], 0  ;;  %s4440_s8 = smov [#allocation5]   ;;  %s5561_s3 = sld [smem:[#allocation21_spill]] }
  0x16   :  { %s55_s5 = sshll.u32 %s4440_s8, 4  ;;  %s56_s5 = int_to_ptr.vmem [resolvable:$true] %s55_s5 }
  0x1b   :  { %s4276_s6 = scalar_lea.hbm %s5561_s3, 256 }
  0x1c   :  { %p4277_p0 = scmp.ne.s32.totalorder %s5561_s3, %s4276_s6  ;;  %p4280_p1 = scmp.lt.u32.totalorder %s4276_s6, %s5561_s3 }
  0x1e   :  { %p4282_p2 = pnand %p4280_p1, %p4277_p0 }
  0x20   :  { %4285 = shalt.err (!%p4282_p2)
}
  0x21   :  { %s4286_s2 = scalar_lea.vmem %s56_s5, 256  ;;  %p4291_p4 = scmp.lt.s32.totalorder %s56_s5, %s56_s5 }
  0x22   :  { %p4287_p3 = scmp.ne.s32.totalorder %s56_s5, %s4286_s2  ;;  %p4292_p5 = scmp.lt.s32.totalorder %s4286_s2, %s4286_s2 }
  0x24   :  { %p4293_p6 = por %p4292_p5, %p4291_p4 }
  0x26   :  { %p4294_p7 = pnand %p4293_p6, %p4287_p3 }
  0x28   :  { %4297 = shalt.err (!%p4294_p7)
}
  0x29   :  { %s4441_s7 = smov 128   ;;  %s4442_s12 = smov 8  }
  0x2a   :  { %61 = dma.hbm_to_vmem [thread:$0]  %s5561_s3, 256, %s56_s5, [#allocation6], %s4441_s7, %s4441_s7, %s4442_s12  }
  0x2b   :  { %s4443_s8 = smov [#allocation8]   ;;  %s4444_s30 = smov [#allocation2]  }
  0x2c   :  { %s86_s9 = sshll.u32 %s4443_s8, 4  ;;  %s46_s6 = sshll.u32 %s4444_s30, 4  ;;  %s87_s9 = int_to_ptr.vmem [resolvable:$true] %s86_s9  ;;  %s47_s6 = int_to_ptr.vmem [resolvable:$true] %s46_s6 }
  0x2d   :  { %s5562_s11 = sld [smem:[#allocation26_spill]] }
  0x33   :  { %s4298_s29 = scalar_lea.hbm %s5562_s11, 32 }
  0x34   :  { %p4299_p8 = scmp.ne.s32.totalorder %s5562_s11, %s4298_s29  ;;  %p4302_p9 = scmp.lt.u32.totalorder %s4298_s29, %s5562_s11 }
  0x36   :  { %p4304_p10 = pnand %p4302_p9, %p4299_p8 }
  0x38   :  { %4307 = shalt.err (!%p4304_p10)
}
  0x39   :  { %s4308_s5 = scalar_lea.vmem %s87_s9, 32  ;;  %p4313_p12 = scmp.lt.s32.totalorder %s87_s9, %s87_s9 }
  0x3a   :  { %p4309_p11 = scmp.ne.s32.totalorder %s87_s9, %s4308_s5  ;;  %p4314_p13 = scmp.lt.s32.totalorder %s4308_s5, %s4308_s5 }
  0x3c   :  { %p4315_p0 = por %p4314_p13, %p4313_p12 }
  0x3e   :  { %p4316_p1 = pnand %p4315_p0, %p4309_p11 }
  0x40   :  { %4319 = shalt.err (!%p4316_p1)
}
  0x41   :  { %89 = dma.hbm_to_vmem [thread:$0]  %s5562_s11, 32, %s87_s9, [#allocation9]  }
  0x42   :  { %s5563_s8 = sld [smem:[#allocation20_spill]] }
  0x48   :  { %s4320_s30 = scalar_lea.hbm %s5563_s8, 16 }
  0x49   :  { %p4321_p2 = scmp.ne.s32.totalorder %s5563_s8, %s4320_s30  ;;  %p4324_p3 = scmp.lt.u32.totalorder %s4320_s30, %s5563_s8 }
  0x4b   :  { %p4326_p4 = pnand %p4324_p3, %p4321_p2 }
  0x4d   :  { %4329 = shalt.err (!%p4326_p4)
}
  0x4e   :  { %s4330_s29 = scalar_lea.vmem %s47_s6, 16  ;;  %s4334_s2 = scalar_lea.vmem %s47_s6, 32 }
  0x4f   :  { %p4331_p5 = scmp.ne.s32.totalorder %s47_s6, %s4330_s29  ;;  %p4335_p6 = scmp.lt.s32.totalorder %s47_s6, %s47_s6 }
  0x50   :  { %p4336_p7 = scmp.lt.s32.totalorder %s4334_s2, %s4330_s29 }
  0x52   :  { %p4337_p8 = por %p4336_p7, %p4335_p6 }
  0x54   :  { %p4338_p9 = pnand %p4337_p8, %p4331_p5 }
  0x56   :  { %4341 = shalt.err (!%p4338_p9)
}
  0x57   :  { %49 = dma.hbm_to_vmem [thread:$0]  %s5563_s8, 16, %s47_s6, [#allocation3]  }
  0x58   :  { %s4445_s5 = smov [#allocation7]   ;;  %s4446_s1 = smov [#allocation10]  }
  0x59   :  { %s73_s3 = sshll.u32 %s4445_s5, 4  ;;  %s96_s28 = sshll.u32 %s4446_s1, 4  ;;  %s74_s3 = int_to_ptr.vmem [resolvable:$true] %s73_s3  ;;  %s97_s28 = int_to_ptr.vmem [resolvable:$true] %s96_s28 }
  0x5a   :  { %s5564_s25 = sld [smem:[#allocation25_spill]] }
  0x60   :  { %s4342_s27 = scalar_lea.hbm %s5564_s25, 256 }
  0x61   :  { %p4343_p10 = scmp.ne.s32.totalorder %s5564_s25, %s4342_s27  ;;  %p4346_p11 = scmp.lt.u32.totalorder %s4342_s27, %s5564_s25 }
  0x63   :  { %p4348_p12 = pnand %p4346_p11, %p4343_p10 }
  0x65   :  { %4351 = shalt.err (!%p4348_p12)
}
  0x66   :  { %s4352_s6 = scalar_lea.vmem %s74_s3, 256  ;;  %p4357_p0 = scmp.lt.s32.totalorder %s74_s3, %s74_s3 }
  0x67   :  { %p4353_p13 = scmp.ne.s32.totalorder %s74_s3, %s4352_s6  ;;  %p4358_p1 = scmp.lt.s32.totalorder %s4352_s6, %s4352_s6 }
  0x69   :  { %p4359_p2 = por %p4358_p1, %p4357_p0 }
  0x6b   :  { %p4360_p3 = pnand %p4359_p2, %p4353_p13 }
  0x6d   :  { %4363 = shalt.err (!%p4360_p3)
}
  0x6e   :  { %79 = dma.hbm_to_vmem [thread:$0]  %s5564_s25, 256, %s74_s3, [#allocation6], %s4441_s7, %s4441_s7, %s4442_s12  }
  0x6f   :  { %s5565_s1 = sld [smem:[#allocation27_spill]] }
  0x75   :  { %s4364_s4 = scalar_lea.hbm %s5565_s1, 16 }
  0x76   :  { %p4365_p4 = scmp.ne.s32.totalorder %s5565_s1, %s4364_s4  ;;  %p4368_p5 = scmp.lt.u32.totalorder %s4364_s4, %s5565_s1 }
  0x78   :  { %p4370_p6 = pnand %p4368_p5, %p4365_p4 }
  0x7a   :  { %4373 = shalt.err (!%p4370_p6)
}
  0x7b   :  { %s4374_s29 = scalar_lea.vmem %s97_s28, 16  ;;  %s4378_s2 = scalar_lea.vmem %s97_s28, 32 }
  0x7c   :  { %p4375_p7 = scmp.ne.s32.totalorder %s97_s28, %s4374_s29  ;;  %p4379_p8 = scmp.lt.s32.totalorder %s97_s28, %s97_s28 }
  0x7d   :  { %p4380_p9 = scmp.lt.s32.totalorder %s4378_s2, %s4374_s29 }
  0x7f   :  { %p4381_p10 = por %p4380_p9, %p4379_p8 }
  0x81   :  { %p4382_p11 = pnand %p4381_p10, %p4375_p7 }
  0x83   :  { %4385 = shalt.err (!%p4382_p11)
}
  0x84   :  { %99 = dma.hbm_to_vmem [thread:$0]  %s5565_s1, 16, %s97_s28, [#allocation9]  }
  0x85   :  { %s4447_s3 = smov [#allocation11]   ;;  %s5566_s9 = sld [smem:[#allocation28_spill]] }
  0x86   :  { %s106_s25 = sshll.u32 %s4447_s3, 4  ;;  %s107_s25 = int_to_ptr.vmem [resolvable:$true] %s106_s25 }
  0x8b   :  { %s4386_s11 = scalar_lea.hbm %s5566_s9, 16 }
  0x8c   :  { %p4387_p12 = scmp.ne.s32.totalorder %s5566_s9, %s4386_s11  ;;  %p4390_p13 = scmp.lt.u32.totalorder %s4386_s11, %s5566_s9 }
  0x8e   :  { %p4392_p0 = pnand %p4390_p13, %p4387_p12 }
  0x90   :  { %4395 = shalt.err (!%p4392_p0)
}
  0x91   :  { %s4396_s10 = scalar_lea.vmem %s107_s25, 16  ;;  %s4400_s28 = scalar_lea.vmem %s107_s25, 32 }
  0x92   :  { %p4397_p1 = scmp.ne.s32.totalorder %s107_s25, %s4396_s10  ;;  %p4401_p2 = scmp.lt.s32.totalorder %s107_s25, %s107_s25 }
  0x93   :  { %p4402_p3 = scmp.lt.s32.totalorder %s4400_s28, %s4396_s10 }
  0x95   :  { %p4403_p4 = por %p4402_p3, %p4401_p2 }
  0x97   :  { %p4404_p5 = pnand %p4403_p4, %p4397_p1 }
  0x99   :  { %4407 = shalt.err (!%p4404_p5)
}
  0x9a   :  { %109 = dma.hbm_to_vmem [thread:$0]  %s5566_s9, 16, %s107_s25, [#allocation12]  }
  0x9b   :  { %4430 = dma.done.wait [#allocation3], 16  }
  0x9c   :  { %4431 = vsyncadd [#allocation3], 4294967280 }
  0x9d   :  { %4432 = dma.done.wait [#allocation6], 512  }
  0x9e   :  { %4433 = vsyncadd [#allocation6], 4294966784 }
  0x9f   :  { %4434 = dma.done.wait [#allocation9], 48  }
  0xa0   :  { %4435 = vsyncadd [#allocation9], 4294967248 }
  0xa1   :  { %4436 = dma.done.wait [#allocation12], 16  }
  0xa2   :  { %4437 = vsyncadd [#allocation12], 4294967280  ;;  %v4448_v0 = vmov 0   ;;  %s5567_s7 = sld [smem:[#allocation19_spill]]  ;;  %s5568_s6 = sld [smem:[#allocation24_spill]]  ;;  %v164_v27 = vlaneseq  ;;  %v4449_v30 = vmov 1.0  }
  0xa3   :  { %4173 = vset.pattern.permute.xlu0 %v4448_v0  ;;  %v194_v32 = vld [vmem:[#allocation7] sm:$0xff]  ;;  %v3106_v35 = vld [vmem:[#allocation8] ss:$0 sm:$0xff]  ;;  %vm279_vm2 = vcmask 261120   ;;  %v325_v53 = vld [vmem:[#allocation5 + $0x8] sm:$0xff]  ;;  %v4450_v55 = vmov 0.0|0.0  }
  0xa4   :  { %v4732_v28 = vand.u32 127, %v164_v27  ;;  %v324_v52 = vld [vmem:[#allocation5] sm:$0xff]  ;;  %3934 = vmatprep.subr.bf16.mxu1 %v4450_v55  ;;  %s5569_s3 = sld [smem:[#allocation29_spill]]  ;;  %vm4451_vm3 = vmmov 0   ;;  %v4452_v61 = vmov 0.0   ;;  %vm326_vm4 = vcmask 130048   ;;  %vm4912_vm5 = vmpackc.low %vm279_vm2, %vm279_vm2 }
  0xa5   :  { %v3935_v54 = vpack.c.bf16 %v325_v53, %v324_v52  ;;  %3549 = vmatprep.mubr.msk.f32.mxu1 %vm4451_vm3, %v4452_v61  ;;  %v323_v62 = vld [vmem:[#allocation2] sm:$0x1]  ;;  %s5570_s27 = sld [smem:[#allocation30_spill]]  ;;  %s5571_s29 = sld [smem:[#allocation23_spill]]  ;;  %vm981_vm6 = vcmask 523264   ;;  %vm3084_vm8 = vcmask 9216  }
  0xa6   :  { %s5574_s12 = sld [smem:[#allocation22_spill]]  ;;  %s5575_s8 = sld [smem:[#allocation31_spill]] }
  0xa7   :  { %3936 = vmatpush3.bf16.msra.mxu1 %v3935_v54  ;;  %s5577_s5 = sld [smem:[#allocation33_spill]] }
  0xa8   :  { %v166_v1 = vld [vmem:[%s5567_s7] sm:$0xff]  ;;  %v179_v3 = vld [vmem:[%s5568_s6 + $0x8] sm:$0xff]  ;;  %v180_v4 = vld [vmem:[%s5568_s6 + $0x10] sm:$0xff] }
  0xa9   :  { %v178_v2 = vld [vmem:[%s5568_s6] sm:$0xff]  ;;  %169 = vperm.xlu0 %4173, %v166_v1   ;;  %v181_v5 = vld [vmem:[%s5568_s6 + $0x18] sm:$0xff]  ;;  %v167_v6 = vld [vmem:[%s5567_s7 + $0x8] sm:$0xff] }
  0xaa   :  { %v3902_v7 = vpack.c.bf16 %v179_v3, %v178_v2  ;;  %v3906_v8 = vpack.c.bf16 %v181_v5, %v180_v4  ;;  %v182_v9 = vld [vmem:[%s5568_s6 + $0x20] sm:$0xff]  ;;  %v183_v10 = vld [vmem:[%s5568_s6 + $0x28] sm:$0xff]  ;;  %v184_v12 = vld [vmem:[%s5568_s6 + $0x30] sm:$0xff]  ;;  %3550 = vmatmul.mubr.msk.f32.vlgmr.msra.gmra.mrb[0].mxu1 %vm326_vm4, %v323_v62 }
  0xab   :  { %v3910_v11 = vpack.c.bf16 %v183_v10, %v182_v9  ;;  %v185_v13 = vld [vmem:[%s5568_s6 + $0x38] sm:$0xff]  ;;  %v186_v15 = vld [vmem:[%s5568_s6 + $0x40] sm:$0xff]  ;;  %v187_v16 = vld [vmem:[%s5568_s6 + $0x48] sm:$0xff] }
  0xac   :  { %3903 = vmatprep.subr.bf16.mxu0 %v3902_v7  ;;  %v3914_v14 = vpack.c.bf16 %v185_v13, %v184_v12  ;;  %v3918_v17 = vpack.c.bf16 %v187_v16, %v186_v15  ;;  %v188_v18 = vld [vmem:[%s5568_s6 + $0x50] sm:$0xff]  ;;  %v189_v19 = vld [vmem:[%s5568_s6 + $0x58] sm:$0xff]  ;;  %v190_v21 = vld [vmem:[%s5568_s6 + $0x60] sm:$0xff] }
  0xad   :  { %172 = vperm.xlu0 %4173, %v167_v6   ;;  %3905 = vmatpush3.bf16.msra.mxu0 %v3902_v7  ;;  %v3922_v20 = vpack.c.bf16 %v189_v19, %v188_v18  ;;  %v191_v22 = vld [vmem:[%s5568_s6 + $0x68] sm:$0xff]  ;;  %v192_v24 = vld [vmem:[%s5568_s6 + $0x70] sm:$0xff]  ;;  %v193_v25 = vld [vmem:[%s5568_s6 + $0x78] sm:$0xff] }
  0xae   :  { %3907 = vmatprep.subr.bf16.mxu0 %v3906_v8  ;;  %v3926_v23 = vpack.c.bf16 %v191_v22, %v190_v21  ;;  %v3930_v26 = vpack.c.bf16 %v193_v25, %v192_v24  ;;  %v430_v56 = vld [vmem:[%s5569_s3] sm:$0xff]  ;;  %v431_v57 = vld [vmem:[%s5569_s3 + $0x8] sm:$0xff]  ;;  %v432_v0 = vld [vmem:[%s5569_s3 + $0x10] sm:$0xff] }
  0xaf   :  { %v3133_v58 = vld [vmem:[%s5569_s3 + $0x40] sm:$0xff]  ;;  %v3937_v59 = vpack.c.bf16 %v431_v57, %v430_v56  ;;  %v3134_v60 = vld [vmem:[%s5569_s3 + $0x48] sm:$0xff]  ;;  %v433_v1 = vld [vmem:[%s5569_s3 + $0x18] sm:$0xff] }
  0xb0   :  { %v3953_v63 = vpack.c.bf16 %v3134_v60, %v3133_v58  ;;  %v3135_v2 = vld [vmem:[%s5569_s3 + $0x50] sm:$0xff]  ;;  %v3941_v3 = vpack.c.bf16 %v433_v1, %v432_v0  ;;  %v3136_v4 = vld [vmem:[%s5569_s3 + $0x58] sm:$0xff]  ;;  %v3119_v6 = vld [vmem:[%s5569_s3 + $0x20] sm:$0xff] }
  0xb1   :  { %3909 = vmatpush3.bf16.msra.mxu0 %v3906_v8  ;;  %3938 = vmatprep.subr.bf16.mxu1 %v3937_v59  ;;  %v3957_v5 = vpack.c.bf16 %v3136_v4, %v3135_v2  ;;  %v3120_v7 = vld [vmem:[%s5569_s3 + $0x28] sm:$0xff]  ;;  %v3107_v16 = vld [vmem:[#allocation10] ss:$0 sm:$0xff]  ;;  %v3108_v18 = vld [vmem:[#allocation11] ss:$0 sm:$0xff] }
  0xb2   :  { %3911 = vmatprep.subr.bf16.mxu0 %v3910_v11  ;;  %3940 = vmatpush3.bf16.msra.mxu1 %v3937_v59  ;;  %v3945_v8 = vpack.c.bf16 %v3120_v7, %v3119_v6  ;;  %v3122_v24 = vld [vmem:[%s5569_s3 + $0x38] sm:$0xff]  ;;  %v4878_v58 = vld [vmem:[%s5571_s29 + $0x28] sm:$0xff] }
  0xb3   :  { %3942 = vmatprep.subr.bf16.mxu1 %v3941_v3  ;;  %v4894_v6 = vld [vmem:[%s5571_s29 + $0x38] sm:$0xff] }
  0xb5   :  { %3913 = vmatpush3.bf16.msra.mxu0 %v3910_v11 }
  0xb6   :  { %3915 = vmatprep.subr.bf16.mxu0 %v3914_v14  ;;  %3944 = vmatpush3.bf16.msra.mxu1 %v3941_v3 }
  0xb7   :  { %3946 = vmatprep.subr.bf16.mxu1 %v3945_v8 }
  0xb9   :  { %3917 = vmatpush3.bf16.msra.mxu0 %v3914_v14 }
  0xba   :  { %3919 = vmatprep.subr.bf16.mxu0 %v3918_v17 }
  0xbd   :  { %3921 = vmatpush3.bf16.msra.mxu0 %v3918_v17 }
  0xbe   :  { %3923 = vmatprep.subr.bf16.mxu0 %v3922_v20 }
  0xc1   :  { %3925 = vmatpush3.bf16.msra.mxu0 %v3922_v20 }
  0xc2   :  { %3927 = vmatprep.subr.bf16.mxu0 %v3926_v23 }
  0xc5   :  { %3929 = vmatpush3.bf16.msra.mxu0 %v3926_v23  ;;  %v3121_v23 = vld [vmem:[%s5569_s3 + $0x30] sm:$0xff] }
  0xc6   :  { %3931 = vmatprep.subr.bf16.mxu0 %v3930_v26 }
  0xc9   :  { %3933 = vmatpush3.bf16.msra.mxu0 %v3930_v26 }
  0xca   :  { %3954 = vmatprep.subr.bf16.mxu0 %v3953_v63 }
 0x128   :  { %v170_v29 = vpop.permute.xlu0 %169 }
 0x129   :  { %vm174_vm0 = vcmp.eq.s32.totalorder %v4732_v28, %v170_v29  ;;  %v3949_v29 = vpack.c.bf16 %v3122_v24, %v3121_v23 }
 0x12a   :  { %3542 = vmatprep.mubr.msk.f32.mxu0 %vm174_vm0, %v4449_v30 }
 0x12c   :  { %v173_v31 = vpop.permute.xlu0 %172 }
 0x12d   :  { %vm175_vm1 = vcmp.eq.s32.totalorder %v4732_v28, %v173_v31 }
 0x12e   :  { %3543 = vmatmul.mubr.msk.f32.vlgmr.msra.gmra.mrb[0].mxu0 %vm175_vm1, %v4449_v30 }
 0x12f   :  { %3956 = vmatpush3.bf16.msra.mxu0 %v3953_v63  ;;  %v4885_v63 = vld [vmem:[%s5571_s29 + $0x20] sm:$0xff] }
 0x130   :  { %3958 = vmatprep.subr.bf16.mxu0 %v3957_v5 }
 0x133   :  { %3960 = vmatpush3.bf16.msra.mxu0 %v3957_v5 }
 0x17d   :  { %v4832_v30 = vpop.f32.mrb[0].mxu1 }
 0x17e   :  { %v3551_v31 = vpop.f32.mrb[1].mxu1 }
 0x201   :  { %v3544_v33 = vpop.f32.mrb[0].mxu0 }
 0x202   :  { %v261_v34 = vpop.f32.mrb[1].mxu0  ;;  %v267_v36 = vadd.f32 %v3544_v33, %v194_v32  ;;  %v4840_v33 = vld [vmem:[%s5570_s27] ss:$0 sm:$0xff] }
 0x203   :  { %v262_v37 = vadd.f32 %v261_v34, %v194_v32  ;;  %v3138_v32 = vld [vmem:[%s5570_s27 + $0x2] ss:$0 sm:$0xff]  ;;  %v4845_v34 = vld [vmem:[%s5571_s29 + $0x8] sm:$0xff] }
 0x204   :  { %v276_v40 = vadd.f32 %v3106_v35, %v267_v36 }
 0x205   :  { %v275_v38 = vadd.f32 %v3106_v35, %v262_v37 }
 0x206   :  { %v283_v41 = vsel %vm279_vm2, %v276_v40, 0.0 }
 0x207   :  { %v280_v39 = vsel %vm279_vm2, %v275_v38, 0.0 }
 0x208   :  { %281 = vadd.xlane.f32.xlu1 %v280_v39 }
 0x20c   :  { %284 = vadd.xlane.f32.xlu1 %v283_v41 }
 0x295   :  { %v282_v42 = vpop.xlane.xlu1 %281 }
 0x296   :  { %v287_v43 = vmul.f32 0.03125, %v282_v42 }
 0x298   :  { %v289_v44 = vsub.f32 %v275_v38, %v287_v43  ;;  %v4852_v38 = vld [vmem:[%s5571_s29] sm:$0xff] }
 0x299   :  { %v285_v45 = vpop.xlane.xlu1 %284 }
 0x29a   :  { %v288_v46 = vmul.f32 0.03125, %v285_v45  ;;  %v291_v47 = vmul.f32 %v289_v44, %v289_v44 }
 0x29c   :  { %v290_v48 = vsub.f32 %v276_v40, %v288_v46  ;;  %v293_v49 = vsel %vm279_vm2, %v291_v47, 0.0  ;;  %v4861_v46 = vld [vmem:[%s5571_s29 + $0x18] sm:$0xff] }
 0x29d   :  { %294 = vadd.xlane.f32.xlu0 %v293_v49 }
 0x29e   :  { %v292_v50 = vmul.f32 %v290_v48, %v290_v48 }
 0x2a0   :  { %v296_v51 = vsel %vm279_vm2, %v292_v50, 0.0  ;;  %v4868_v50 = vld [vmem:[%s5571_s29 + $0x10] sm:$0xff] }
 0x2a1   :  { %297 = vadd.xlane.f32.xlu1 %v296_v51 }
 0x32a   :  { %v295_v9 = vpop.xlane.xlu0 %294 }
 0x32b   :  { %v299_v10 = vmul.f32 0.03125, %v295_v9 }
 0x32d   :  { %v301_v11 = vadd.f32 1e-12, %v299_v10  ;;  %v4901_v10 = vld [vmem:[%s5571_s29 + $0x30] sm:$0xff] }
 0x32e   :  { %v298_v12 = vpop.xlane.xlu1 %297 }
 0x32f   :  { %4174 = vrsqrt.f32 %v301_v11  ;;  %v300_v13 = vmul.f32 0.03125, %v298_v12 }
 0x331   :  { %v302_v14 = vadd.f32 1e-12, %v300_v13 }
 0x333   :  { %4176 = vrsqrt.f32 %v302_v14  ;;  %v3124_v14 = vld [vmem:[%s5570_s27 + $0x1] ss:$0 sm:$0xff] }
 0x339   :  { %v4175_v15 = vpop.eup %4174 }
 0x33a   :  { %v305_v17 = vmul.f32 %v4175_v15, %v289_v44 }
 0x33c   :  { %v313_v19 = vmul.f32 %v3107_v16, %v305_v17 }
 0x33d   :  { %v4177_v20 = vpop.eup %4176 }
 0x33e   :  { %v4774_v21 = vadd.f32 %v3108_v18, %v313_v19  ;;  %v306_v22 = vmul.f32 %v4177_v20, %v290_v48 }
 0x340   :  { %v314_v25 = vmul.f32 %v3107_v16, %v306_v22  ;;  %3560 = vmatprep.mubr.msk.f32.mxu1 %vm279_vm2, %v4774_v21  ;;  %3600 = vmatprep.mubr.msk.f32.mxu0 %vm279_vm2, %v4774_v21 }
 0x342   :  { %v4786_v26 = vadd.f32 %v3108_v18, %v314_v25 }
 0x344   :  { %3561 = vmatmul.mubr.msk.f32.vlgmr.msra.gmra.mrb[2].mxu1 %vm279_vm2, %v4786_v26  ;;  %3601 = vmatmul.mubr.msk.f32.vlgmr.msra.gmra.mrb[2].mxu0 %vm279_vm2, %v4786_v26 }
 0x345   :  { %3563 = vmatprep.mubr.msk.f32.mxu1 %vm279_vm2, %v4774_v21  ;;  %3948 = vmatpush3.bf16.msra.mxu1 %v3945_v8 }
 0x346   :  { %3603 = vmatprep.mubr.msk.f32.mxu0 %vm279_vm2, %v4774_v21  ;;  %3950 = vmatprep.subr.bf16.mxu1 %v3949_v29 }
 0x348   :  { %3564 = vmatmul.mubr.msk.f32.gmra.mrb[4].mxu1 %vm279_vm2, %v4786_v26  ;;  %3604 = vmatmul.mubr.msk.f32.gmra.mrb[4].mxu0 %vm279_vm2, %v4786_v26 }
 0x349   :  { %3566 = vmatprep.mubr.msk.f32.mxu1 %vm279_vm2, %v4774_v21  ;;  %3606 = vmatprep.mubr.msk.f32.mxu0 %vm279_vm2, %v4774_v21 }
 0x34a   :  { %3952 = vmatpush3.bf16.msra.mxu1 %v3949_v29 }
 0x34c   :  { %3567 = vmatmul.mubr.msk.f32.gmra.mrb[6].mxu1 %vm279_vm2, %v4786_v26  ;;  %3607 = vmatmul.mubr.msk.f32.gmra.mrb[6].mxu0 %vm279_vm2, %v4786_v26 }
 0x34d   :  { %3569 = vmatprep.mubr.msk.f32.mxu1 %vm279_vm2, %v4774_v21  ;;  %3609 = vmatprep.mubr.msk.f32.mxu0 %vm279_vm2, %v4774_v21 }
 0x350   :  { %3570 = vmatmul.mubr.msk.f32.gmra.mrb[8].mxu1 %vm279_vm2, %v4786_v26  ;;  %3610 = vmatmul.mubr.msk.f32.gmra.mrb[8].mxu0 %vm279_vm2, %v4786_v26 }
 0x351   :  { %3580 = vmatprep.mubr.msk.f32.mxu1 %vm279_vm2, %v4774_v21 }
 0x354   :  { %3581 = vmatmul.mubr.msk.f32.vlgmr.msra.gmra.mrb[10].mxu1 %vm279_vm2, %v4786_v26 }
 0x355   :  { %3583 = vmatprep.mubr.msk.f32.mxu1 %vm279_vm2, %v4774_v21 }
 0x358   :  { %3584 = vmatmul.mubr.msk.f32.gmra.mrb[12].mxu1 %vm279_vm2, %v4786_v26 }
 0x359   :  { %3586 = vmatprep.mubr.msk.f32.mxu1 %vm279_vm2, %v4774_v21 }
 0x35c   :  { %3587 = vmatmul.mubr.msk.f32.gmra.mrb[14].mxu1 %vm279_vm2, %v4786_v26 }
 0x35d   :  { %3589 = vmatprep.mubr.msk.f32.mxu1 %vm279_vm2, %v4774_v21 }
 0x360   :  { %3590 = vmatmul.mubr.msk.f32.gmra.mrb[16].mxu1 %vm279_vm2, %v4786_v26 }
 0x417   :  { %v4847_v35 = vpop.f32.mrb[2].mxu1  ;;  %v3602_v36 = vpop.f32.mrb[2].mxu0 }
 0x418   :  { %v771_v37 = vadd.f32 %v3602_v36, %v3138_v32  ;;  %v513_v39 = vpop.f32.mrb[3].mxu1  ;;  %v765_v40 = vpop.f32.mrb[3].mxu0 }
 0x419   :  { %v514_v41 = vadd.f32 %v4840_v33, %v513_v39  ;;  %v766_v42 = vadd.f32 %v3138_v32, %v765_v40 }
 0x41a   :  { %v805_v43 = vmul.f32 %v771_v37, %v4845_v34 }
 0x41b   :  { %v552_v44 = vmul.f32 %v514_v41, %v4852_v38  ;;  %v804_v45 = vmul.f32 %v766_v42, %v4852_v38  ;;  %v4863_v47 = vpop.f32.mrb[4].mxu1  ;;  %v3605_v48 = vpop.f32.mrb[4].mxu0 }
 0x41c   :  { %v781_v49 = vadd.f32 %v3605_v48, %v3138_v32  ;;  %v4870_v51 = vpop.f32.mrb[5].mxu1  ;;  %v775_v52 = vpop.f32.mrb[5].mxu0 }
 0x41d   :  { %v776_v53 = vadd.f32 %v3138_v32, %v775_v52  ;;  %3628 = vmatprep.mubr.msk.f32.mxu1 %vm279_vm2, %v552_v44  ;;  %v3985_v54 = vpack.c.bf16 %v805_v43, %v804_v45 }
 0x41e   :  { %v807_v56 = vmul.f32 %v781_v49, %v4861_v46 }
 0x41f   :  { %v806_v57 = vmul.f32 %v776_v53, %v4868_v50  ;;  %v4880_v59 = vpop.f32.mrb[6].mxu1  ;;  %v3608_v60 = vpop.f32.mrb[6].mxu0  ;;  %3986 = vmatprep.subr.bf16.mxu0 %v3985_v54 }
 0x420   :  { %v791_v62 = vadd.f32 %v3608_v60, %v3138_v32  ;;  %v4887_v0 = vpop.f32.mrb[7].mxu1  ;;  %v785_v1 = vpop.f32.mrb[7].mxu0  ;;  %3988 = vmatpush3.bf16.msra.mxu0 %v3985_v54 }
 0x421   :  { %v786_v2 = vadd.f32 %v3138_v32, %v785_v1  ;;  %v3989_v3 = vpack.c.bf16 %v807_v56, %v806_v57 }
 0x422   :  { %v809_v4 = vmul.f32 %v791_v62, %v4878_v58 }
 0x423   :  { %v808_v5 = vmul.f32 %v786_v2, %v4885_v63  ;;  %v4896_v7 = vpop.f32.mrb[8].mxu1  ;;  %v3611_v8 = vpop.f32.mrb[8].mxu0  ;;  %3990 = vmatprep.subr.bf16.mxu0 %v3989_v3 }
 0x424   :  { %v801_v9 = vadd.f32 %v3611_v8, %v3138_v32  ;;  %v543_v11 = vpop.f32.mrb[9].mxu1  ;;  %v795_v12 = vpop.f32.mrb[9].mxu0  ;;  %3992 = vmatpush3.bf16.msra.mxu0 %v3989_v3  ;;  %v519_v3 = vadd.f32 %v4847_v35, %v4840_v33  ;;  %v529_v8 = vadd.f32 %v4863_v47, %v4840_v33  ;;  %v539_v35 = vadd.f32 %v4880_v59, %v4840_v33 }
 0x425   :  { %v796_v13 = vadd.f32 %v3138_v32, %v795_v12  ;;  %v3993_v15 = vpack.c.bf16 %v809_v4, %v808_v5  ;;  %v524_v4 = vadd.f32 %v4840_v33, %v4870_v51  ;;  %v534_v12 = vadd.f32 %v4840_v33, %v4887_v0 }
 0x426   :  { %v811_v16 = vmul.f32 %v801_v9, %v4894_v6  ;;  %v553_v5 = vmul.f32 %v519_v3, %v4845_v34  ;;  %v557_v47 = vmul.f32 %v539_v35, %v4878_v58  ;;  %v549_v0 = vadd.f32 %v4896_v7, %v4840_v33 }
 0x427   :  { %v810_v17 = vmul.f32 %v796_v13, %v4901_v10  ;;  %v3582_v18 = vpop.f32.mrb[10].mxu1  ;;  %3994 = vmatprep.subr.bf16.mxu0 %v3993_v15  ;;  %v554_v9 = vmul.f32 %v524_v4, %v4868_v50  ;;  %v555_v13 = vmul.f32 %v529_v8, %v4861_v46  ;;  %v556_v51 = vmul.f32 %v534_v12, %v4885_v63 }
 0x428   :  { %v645_v19 = vadd.f32 %v3582_v18, %v3124_v14  ;;  %v639_v20 = vpop.f32.mrb[11].mxu1  ;;  %3996 = vmatpush3.bf16.msra.mxu0 %v3993_v15  ;;  %v559_v59 = vmul.f32 %v549_v0, %v4894_v6 }
 0x429   :  { %v640_v22 = vadd.f32 %v3124_v14, %v639_v20  ;;  %v3997_v23 = vpack.c.bf16 %v811_v16, %v810_v17  ;;  %v4967_v16 = vshrl.u32 %v164_v27, 7 }
 0x42a   :  { %v679_v24 = vmul.f32 %v645_v19, %v4845_v34 }
 0x42b   :  { %v678_v25 = vmul.f32 %v640_v22, %v4852_v38  ;;  %v3585_v29 = vpop.f32.mrb[12].mxu1  ;;  %3998 = vmatprep.subr.bf16.mxu0 %v3997_v23  ;;  %v412_v18 = vsub.s32 0, %v4967_v16  ;;  %v401_v22 = vld [vmem:[%s5574_s12 + $0x8] sm:$0xff] }
 0x42c   :  { %v655_v31 = vadd.f32 %v3585_v29, %v3124_v14  ;;  %v649_v32 = vpop.f32.mrb[13].mxu1  ;;  %4000 = vmatpush3.bf16.msra.mxu0 %v3997_v23 }
 0x42d   :  { %v3961_v37 = vpack.c.bf16 %v679_v24, %v678_v25  ;;  %v650_v39 = vadd.f32 %v3124_v14, %v649_v32  ;;  %v402_v32 = vld [vmem:[%s5574_s12 + $0x10] sm:$0xff] }
 0x42e   :  { %v681_v40 = vmul.f32 %v655_v31, %v4861_v46 }
 0x42f   :  { %v680_v41 = vmul.f32 %v650_v39, %v4868_v50  ;;  %v3588_v42 = vpop.f32.mrb[14].mxu1  ;;  %3963 = vmatprep.subr.msk.bf16.mxu1 %vm4912_vm5, %v3961_v37 }
 0x430   :  { %v665_v43 = vadd.f32 %v3588_v42, %v3124_v14  ;;  %v659_v44 = vpop.f32.mrb[15].mxu1  ;;  %3966 = vmatpush3.bf16.xpose.msk.msra.mxu1 %vm4912_vm5, %v3961_v37 }
 0x431   :  { %v3967_v45 = vpack.c.bf16 %v681_v40, %v680_v41  ;;  %v660_v48 = vadd.f32 %v3124_v14, %v659_v44  ;;  %v403_v44 = vld [vmem:[%s5574_s12 + $0x18] sm:$0xff] }
 0x432   :  { %v683_v49 = vmul.f32 %v665_v43, %v4878_v58 }
 0x433   :  { %v682_v52 = vmul.f32 %v660_v48, %v4885_v63  ;;  %v3591_v53 = vpop.f32.mrb[16].mxu1  ;;  %3969 = vmatprep.subr.msk.bf16.mxu1 %vm4912_vm5, %v3967_v45 }
 0x434   :  { %v675_v54 = vadd.f32 %v3591_v53, %v3124_v14  ;;  %v669_v56 = vpop.f32.mrb[17].mxu1 }
 0x435   :  { %v3973_v57 = vpack.c.bf16 %v683_v49, %v682_v52  ;;  %v670_v60 = vadd.f32 %v3124_v14, %v669_v56  ;;  %v544_v14 = vadd.f32 %v4840_v33, %v543_v11  ;;  %v408_v11 = vsub.f32 1.0, %v4832_v30  ;;  %v400_v33 = vld [vmem:[%s5574_s12] sm:$0xff]  ;;  %v407_v52 = vld [vmem:[%s5574_s12 + $0x38] sm:$0xff] }
 0x436   :  { %v685_v62 = vmul.f32 %v675_v54, %v4894_v6 }
 0x437   :  { %v684_v1 = vmul.f32 %v670_v60, %v4901_v10  ;;  %v558_v15 = vmul.f32 %v544_v14, %v4901_v10  ;;  %v409_v17 = vmul.f32 -10000.0, %v408_v11  ;;  %v406_v14 = vld [vmem:[%s5574_s12 + $0x30] sm:$0xff] }
 0x438   :  { %3972 = vmatpush3.bf16.xpose.msk.msra.mxu1 %vm4912_vm5, %v3967_v45 }
 0x439   :  { %v3979_v2 = vpack.c.bf16 %v685_v62, %v684_v1  ;;  %3975 = vmatprep.subr.msk.bf16.mxu1 %vm4912_vm5, %v3973_v57  ;;  %v413_v19 = vrot.slane %v409_v17, %v412_v18  ;;  %v404_v62 = vld [vmem:[%s5574_s12 + $0x20] sm:$0xff] }
 0x43b   :  { %v4976_v30 = vadd.f32 %v413_v19, %v400_v33  ;;  %v4979_v29 = vadd.f32 %v413_v19, %v401_v22  ;;  %v4986_v42 = vadd.f32 %v413_v19, %v402_v32  ;;  %v4996_v54 = vadd.f32 %v413_v19, %v403_v44 }
 0x43c   :  { %v4998_v60 = vadd.f32 %v413_v19, %v407_v52 }
 0x440   :  { %3978 = vmatpush3.bf16.xpose.msk.msra.mxu1 %vm4912_vm5, %v3973_v57 }
 0x441   :  { %3981 = vmatprep.subr.msk.bf16.mxu1 %vm4912_vm5, %v3979_v2 }
 0x448   :  { %3984 = vmatpush3.bf16.xpose.msk.msra.mxu1 %vm4912_vm5, %v3979_v2 }
 0x44f   :  { %3629 = vmatmul.mubr.msk.f32.vlgmr.msra.gmra.mrb[18].mxu1 %vm279_vm2, %v553_v5  ;;  %v5006_v5 = vadd.f32 %v413_v19, %v404_v62 }
 0x450   :  { %3631 = vmatprep.mubr.msk.f32.mxu1 %vm279_vm2, %v554_v9  ;;  %v405_v9 = vld [vmem:[%s5574_s12 + $0x28] sm:$0xff] }
 0x453   :  { %3632 = vmatmul.mubr.msk.f32.gmra.mrb[20].mxu1 %vm279_vm2, %v555_v13 }
 0x454   :  { %3634 = vmatprep.mubr.msk.f32.mxu1 %vm279_vm2, %v556_v51  ;;  %v5014_v51 = vadd.f32 %v413_v19, %v405_v9 }
 0x457   :  { %3635 = vmatmul.mubr.msk.f32.gmra.mrb[22].mxu1 %vm279_vm2, %v557_v47 }
 0x458   :  { %3637 = vmatprep.mubr.msk.f32.mxu1 %vm279_vm2, %v558_v15 }
 0x45b   :  { %3638 = vmatmul.mubr.msk.f32.gmra.mrb[24].mxu1 %vm279_vm2, %v559_v59  ;;  %v5021_v59 = vadd.f32 %v413_v19, %v406_v14 }
 0x522   :  { %v3630_v7 = vpop.f32.mrb[18].mxu1 }
 0x523   :  { %v926_v20 = vpop.f32.mrb[19].mxu1  ;;  %v966_v23 = vmul.f32 0.35355338, %v3630_v7 }
 0x524   :  { %v965_v24 = vmul.f32 0.35355338, %v926_v20 }
 0x525   :  { %v974_v40 = vadd.f32 %v966_v23, %v4979_v29 }
 0x526   :  { %v3633_v27 = vpop.f32.mrb[20].mxu1  ;;  %v973_v25 = vadd.f32 %v965_v24, %v4976_v30 }
 0x527   :  { %v936_v31 = vpop.f32.mrb[21].mxu1  ;;  %v968_v45 = vmul.f32 0.35355338, %v3633_v27  ;;  %v985_v48 = vsel %vm981_vm6, %v974_v40, -inf }
 0x528   :  { %v967_v37 = vmul.f32 0.35355338, %v936_v31  ;;  %v982_v39 = vsel %vm981_vm6, %v973_v25, -inf }
 0x529   :  { %983 = vmax.xlane.f32.xlu1 %v982_v39  ;;  %v976_v3 = vadd.f32 %v968_v45, %v4996_v54 }
 0x52a   :  { %v3636_v41 = vpop.f32.mrb[22].mxu1  ;;  %v975_v49 = vadd.f32 %v967_v37, %v4986_v42 }
 0x52b   :  { %v946_v43 = vpop.f32.mrb[23].mxu1  ;;  %v970_v12 = vmul.f32 0.35355338, %v3636_v41  ;;  %v991_v13 = vsel %vm981_vm6, %v976_v3, -inf }
 0x52c   :  { %v969_v1 = vmul.f32 0.35355338, %v946_v43  ;;  %v988_v2 = vsel %vm981_vm6, %v975_v49, -inf }
 0x52d   :  { %986 = vmax.xlane.f32.xlu1 %v985_v48  ;;  %v978_v15 = vadd.f32 %v970_v12, %v5014_v51 }
 0x52e   :  { %v3639_v53 = vpop.f32.mrb[24].mxu1  ;;  %v977_v35 = vadd.f32 %v969_v1, %v5006_v5 }
 0x52f   :  { %v972_v56 = vmul.f32 0.35355338, %v3639_v53  ;;  %v956_v57 = vpop.f32.mrb[25].mxu1  ;;  %v997_v11 = vsel %vm981_vm6, %v978_v15, -inf }
 0x530   :  { %v971_v47 = vmul.f32 0.35355338, %v956_v57  ;;  %v994_v0 = vsel %vm981_vm6, %v977_v35, -inf }
 0x531   :  { %989 = vmax.xlane.f32.xlu1 %v988_v2  ;;  %v980_v4 = vadd.f32 %v972_v56, %v4998_v60 }
 0x532   :  { %v979_v17 = vadd.f32 %v971_v47, %v5021_v59 }
 0x533   :  { %v1003_v8 = vsel %vm981_vm6, %v980_v4, -inf }
 0x534   :  { %1004 = vmax.xlane.f32.xlu0 %v1003_v8  ;;  %v1000_v18 = vsel %vm981_vm6, %v979_v17, -inf }
 0x535   :  { %992 = vmax.xlane.f32.xlu1 %v991_v13 }
 0x539   :  { %995 = vmax.xlane.f32.xlu1 %v994_v0 }
 0x53d   :  { %998 = vmax.xlane.f32.xlu1 %v997_v11 }
 0x541   :  { %1001 = vmax.xlane.f32.xlu1 %v1000_v18  ;;  %v1205_v18 = vld [vmem:[%s5575_s8] sm:$0xff] }
 0x5b6   :  { %v984_v33 = vpop.xlane.xlu1 %983 }
 0x5b7   :  { %v1006_v7 = vsub.f32 %v973_v25, %v984_v33  ;;  %v1206_v33 = vld [vmem:[%s5575_s8 + $0x8] sm:$0xff] }
 0x5b9   :  { %v1014_v20 = vmul.f32 1.442695, %v1006_v7  ;;  %v4001_v7 = vpack.c.bf16 %v1206_v33, %v1205_v18 }
 0x5ba   :  { %v987_v22 = vpop.xlane.xlu1 %986 }
 0x5bb   :  { %4178 = vpow2.f32 %v1014_v20  ;;  %v1007_v23 = vsub.f32 %v974_v40, %v987_v22  ;;  %4002 = vmatprep.subr.bf16.mxu0 %v4001_v7 }
 0x5bd   :  { %v1016_v24 = vmul.f32 1.442695, %v1007_v23 }
 0x5be   :  { %v990_v27 = vpop.xlane.xlu1 %989 }
 0x5bf   :  { %4180 = vpow2.f32 %v1016_v24  ;;  %v1008_v31 = vsub.f32 %v975_v49, %v990_v27 }
 0x5c1   :  { %v1018_v19 = vmul.f32 1.442695, %v1008_v31  ;;  %v1005_v43 = vpop.xlane.xlu0 %1004 }
 0x5c2   :  { %v993_v32 = vpop.xlane.xlu1 %992  ;;  %v1013_v52 = vsub.f32 %v980_v4, %v1005_v43 }
 0x5c3   :  { %4182 = vpow2.f32 %v1018_v19  ;;  %v1009_v37 = vsub.f32 %v976_v3, %v993_v32  ;;  %v1207_v19 = vld [vmem:[%s5575_s8 + $0x10] sm:$0xff]  ;;  %v1208_v32 = vld [vmem:[%s5575_s8 + $0x18] sm:$0xff] }
 0x5c4   :  { %v1028_v62 = vmul.f32 1.442695, %v1013_v52 }
 0x5c5   :  { %v4179_v39 = vpop.eup %4178  ;;  %v1020_v41 = vmul.f32 1.442695, %v1009_v37 }
 0x5c6   :  { %v996_v44 = vpop.xlane.xlu1 %995  ;;  %v1030_v45 = vsel %vm981_vm6, %v4179_v39, 0.0 }
 0x5c7   :  { %4184 = vpow2.f32 %v1020_v41  ;;  %v1010_v25 = vsub.f32 %v977_v35, %v996_v44  ;;  %1031 = vadd.xlane.f32.xlu1 %v1030_v45  ;;  %v4005_v44 = vpack.c.bf16 %v1208_v32, %v1207_v19  ;;  %v1344_v19 = vld [vmem:[%s5518_s16 + $0x8] sm:$0xff] }
 0x5c9   :  { %v4181_v48 = vpop.eup %4180  ;;  %v1022_v40 = vmul.f32 1.442695, %v1010_v25 }
 0x5ca   :  { %v999_v53 = vpop.xlane.xlu1 %998  ;;  %v1033_v56 = vsel %vm981_vm6, %v4181_v48, 0.0 }
 0x5cb   :  { %4186 = vpow2.f32 %v1022_v40  ;;  %v1011_v49 = vsub.f32 %v978_v15, %v999_v53  ;;  %1034 = vadd.xlane.f32.xlu0 %v1033_v56 }
 0x5cd   :  { %v4183_v57 = vpop.eup %4182  ;;  %v1024_v1 = vmul.f32 1.442695, %v1011_v49 }
 0x5ce   :  { %v1002_v2 = vpop.xlane.xlu1 %1001  ;;  %v1036_v3 = vsel %vm981_vm6, %v4183_v57, 0.0 }
 0x5cf   :  { %4188 = vpow2.f32 %v1024_v1  ;;  %v1012_v8 = vsub.f32 %v979_v17, %v1002_v2  ;;  %1037 = vadd.xlane.f32.xlu1 %v1036_v3 }
 0x5d0   :  { %4190 = vpow2.f32 %v1028_v62 }
 0x5d1   :  { %v4185_v9 = vpop.eup %4184  ;;  %v1026_v12 = vmul.f32 1.442695, %v1012_v8 }
 0x5d2   :  { %v1039_v4 = vsel %vm981_vm6, %v4185_v9, 0.0 }
 0x5d3   :  { %4192 = vpow2.f32 %v1026_v12  ;;  %1040 = vadd.xlane.f32.xlu0 %v1039_v4  ;;  %v3171_v4 = vld [vmem:[%s5515_s13] ss:$0 sm:$0xff] }
 0x5d5   :  { %v4187_v13 = vpop.eup %4186 }
 0x5d6   :  { %v1042_v35 = vsel %vm981_vm6, %v4187_v13, 0.0 }
 0x5d7   :  { %1043 = vadd.xlane.f32.xlu1 %v1042_v35 }
 0x5d9   :  { %v4189_v14 = vpop.eup %4188 }
 0x5da   :  { %v1045_v47 = vsel %vm981_vm6, %v4189_v14, 0.0  ;;  %v4191_v0 = vpop.eup %4190 }
 0x5db   :  { %1046 = vadd.xlane.f32.xlu0 %v1045_v47  ;;  %v1051_v11 = vsel %vm981_vm6, %v4191_v0, 0.0 }
 0x5dd   :  { %v4193_v15 = vpop.eup %4192 }
 0x5de   :  { %v1048_v17 = vsel %vm981_vm6, %v4193_v15, 0.0 }
 0x5df   :  { %1052 = vadd.xlane.f32.xlu0 %v1051_v11  ;;  %1049 = vadd.xlane.f32.xlu1 %v1048_v17 }
 0x654   :  { %v1032_v20 = vpop.xlane.xlu1 %1031 }
 0x655   :  { %4194 = vrcp.f32 %v1032_v20 }
 0x658   :  { %v1035_v22 = vpop.xlane.xlu0 %1034 }
 0x659   :  { %4196 = vrcp.f32 %v1035_v22 }
 0x65c   :  { %v1038_v23 = vpop.xlane.xlu1 %1037 }
 0x65d   :  { %4198 = vrcp.f32 %v1038_v23 }
 0x65f   :  { %v4195_v24 = vpop.eup %4194 }
 0x660   :  { %v1041_v27 = vpop.xlane.xlu0 %1040  ;;  %v1055_v31 = vmul.f32 %v4195_v24, %v4179_v39 }
 0x661   :  { %4200 = vrcp.f32 %v1041_v27 }
 0x662   :  { %3656 = vmatprep.mubr.msk.f32.mxu0 %vm981_vm6, %v1055_v31 }
 0x663   :  { %v4197_v37 = vpop.eup %4196 }
 0x664   :  { %v1057_v41 = vmul.f32 %v4197_v37, %v4181_v48  ;;  %v1044_v43 = vpop.xlane.xlu1 %1043  ;;  %v1345_v37 = vld [vmem:[%s5518_s16 + $0x10] sm:$0xff] }
 0x665   :  { %4202 = vrcp.f32 %v1044_v43 }
 0x666   :  { %3657 = vmatmul.mubr.msk.f32.vlgmr.msra.gmra.mrb[10].mxu0 %vm981_vm6, %v1057_v41  ;;  %v1346_v41 = vld [vmem:[%s5518_s16 + $0x18] sm:$0xff] }
 0x667   :  { %v4199_v45 = vpop.eup %4198  ;;  %4004 = vmatpush3.bf16.msra.mxu0 %v4001_v7  ;;  %v4013_v43 = vpack.c.bf16 %v1346_v41, %v1345_v37 }
 0x668   :  { %v1047_v39 = vpop.xlane.xlu0 %1046  ;;  %v1059_v25 = vmul.f32 %v4199_v45, %v4183_v57  ;;  %4006 = vmatprep.subr.bf16.mxu0 %v4005_v44 }
 0x669   :  { %4204 = vrcp.f32 %v1047_v39 }
 0x66a   :  { %3659 = vmatprep.mubr.msk.f32.mxu0 %vm981_vm6, %v1059_v25 }
 0x66b   :  { %v4201_v52 = vpop.eup %4200  ;;  %4008 = vmatpush3.bf16.msra.mxu0 %v4005_v44 }
 0x66c   :  { %v1053_v40 = vpop.xlane.xlu0 %1052  ;;  %v1050_v53 = vpop.xlane.xlu1 %1049  ;;  %v1061_v56 = vmul.f32 %v4201_v52, %v4185_v9 }
 0x66d   :  { %4206 = vrcp.f32 %v1050_v53 }
 0x66e   :  { %3660 = vmatmul.mubr.msk.f32.gmra.mrb[10].mxu0 %vm981_vm6, %v1061_v56  ;;  %4208 = vrcp.f32 %v1053_v40  ;;  %v3174_v56 = vld [vmem:[%s5516_s14] ss:$0 sm:$0xff] }
 0x66f   :  { %v4203_v48 = vpop.eup %4202 }
 0x670   :  { %v1063_v49 = vmul.f32 %v4203_v48, %v4187_v13 }
 0x672   :  { %3662 = vmatprep.mubr.msk.f32.mxu0 %vm981_vm6, %v1063_v49 }
 0x673   :  { %v4205_v62 = vpop.eup %4204 }
 0x674   :  { %v1065_v1 = vmul.f32 %v4205_v62, %v4189_v14 }
 0x676   :  { %3663 = vmatmul.mubr.msk.f32.gmra.mrb[10].mxu0 %vm981_vm6, %v1065_v1  ;;  %v3175_v1 = vld [vmem:[%s5517_s15] ss:$0 sm:$0xff] }
 0x677   :  { %v4207_v57 = vpop.eup %4206 }
 0x678   :  { %v4209_v2 = vpop.eup %4208  ;;  %v1067_v3 = vmul.f32 %v4207_v57, %v4193_v15 }
 0x679   :  { %v1069_v8 = vmul.f32 %v4209_v2, %v4191_v0 }
 0x67a   :  { %3665 = vmatprep.mubr.msk.f32.mxu0 %vm981_vm6, %v1067_v3 }
 0x67e   :  { %3666 = vmatmul.mubr.msk.f32.gmra.mrb[10].mxu0 %vm981_vm6, %v1069_v8 }
 0x751   :  { %v3667_v9 = vpop.f32.mrb[10].mxu0 }
 0x752   :  { %v1190_v12 = vpop.f32.mrb[11].mxu0 }
 0x753   :  { %3676 = vmatprep.mubr.msk.f32.mxu0 %vm279_vm2, %v1190_v12  ;;  %v1446_v12 = vld [vmem:[%s5520_s18 + $0x8] sm:$0xff] }
 0x754   :  { %3677 = vmatmul.mubr.msk.f32.vlgmr.msra.gmra.mrb[12].mxu0 %vm279_vm2, %v3667_v9  ;;  %v1445_v9 = vld [vmem:[%s5520_s18] sm:$0xff] }
 0x827   :  { %v3678_v13 = vpop.f32.mrb[12].mxu0 }
 0x828   :  { %v1294_v35 = vadd.f32 %v3678_v13, %v3171_v4  ;;  %v1288_v14 = vpop.f32.mrb[13].mxu0  ;;  %v1447_v13 = vld [vmem:[%s5520_s18 + $0x10] sm:$0xff] }
 0x829   :  { %v1289_v47 = vadd.f32 %v3171_v4, %v1288_v14  ;;  %v4017_v4 = vpack.c.bf16 %v1446_v12, %v1445_v9 }
 0x82a   :  { %v1298_v15 = vadd.f32 %v1294_v35, %v4786_v26  ;;  %v1448_v35 = vld [vmem:[%s5520_s18 + $0x18] sm:$0xff] }
 0x82b   :  { %v1297_v0 = vadd.f32 %v1289_v47, %v4774_v21  ;;  %v1343_v21 = vld [vmem:[%s5518_s16] sm:$0xff]  ;;  %4018 = vmatprep.subr.bf16.mxu0 %v4017_v4  ;;  %v4021_v14 = vpack.c.bf16 %v1448_v35, %v1447_v13  ;;  %v3185_v35 = vld [vmem:[%s5569_s3 + $0x68] sm:$0xff] }
 0x82c   :  { %v1304_v11 = vsel %vm279_vm2, %v1298_v15, 0.0  ;;  %v4009_v32 = vpack.c.bf16 %v1344_v19, %v1343_v21  ;;  %4020 = vmatpush3.bf16.msra.mxu0 %v4017_v4  ;;  %v1449_v47 = vld [vmem:[%s5520_s18 + $0x20] sm:$0xff] }
 0x82d   :  { %1305 = vadd.xlane.f32.xlu0 %v1304_v11  ;;  %v1301_v17 = vsel %vm279_vm2, %v1297_v0, 0.0  ;;  %4022 = vmatprep.subr.bf16.mxu0 %v4021_v14  ;;  %v1451_v11 = vld [vmem:[%s5520_s18 + $0x30] sm:$0xff] }
 0x82e   :  { %1302 = vadd.xlane.f32.xlu1 %v1301_v17  ;;  %4010 = vmatprep.subr.bf16.mxu1 %v4009_v32  ;;  %v1452_v17 = vld [vmem:[%s5520_s18 + $0x38] sm:$0xff] }
 0x82f   :  { %4012 = vmatpush3.bf16.msra.mxu1 %v4009_v32 }
 0x830   :  { %4014 = vmatprep.subr.bf16.mxu1 %v4013_v43  ;;  %4024 = vmatpush3.bf16.msra.mxu0 %v4021_v14  ;;  %v3198_v14 = vld [vmem:[%s5569_s3 + $0x80] sm:$0xff] }
 0x833   :  { %4016 = vmatpush3.bf16.msra.mxu1 %v4013_v43 }
 0x8ba   :  { %v1306_v18 = vpop.xlane.xlu0 %1305 }
 0x8bb   :  { %v1308_v33 = vmul.f32 0.03125, %v1306_v18  ;;  %v1303_v7 = vpop.xlane.xlu1 %1302  ;;  %v4029_v18 = vpack.c.bf16 %v1452_v17, %v1451_v11  ;;  %v3186_v11 = vld [vmem:[%s5569_s3 + $0x70] sm:$0xff]  ;;  %v3187_v17 = vld [vmem:[%s5569_s3 + $0x78] sm:$0xff] }
 0x8bc   :  { %v1307_v20 = vmul.f32 0.03125, %v1303_v7 }
 0x8bd   :  { %v1310_v22 = vsub.f32 %v1298_v15, %v1308_v33  ;;  %v1450_v15 = vld [vmem:[%s5520_s18 + $0x28] sm:$0xff]  ;;  %v3176_v33 = vld [vmem:[%s5519_s17] ss:$0 sm:$0xff] }
 0x8be   :  { %v1309_v23 = vsub.f32 %v1297_v0, %v1307_v20  ;;  %v4025_v0 = vpack.c.bf16 %v1450_v15, %v1449_v47  ;;  %v3199_v15 = vld [vmem:[%s5569_s3 + $0x88] sm:$0xff] }
 0x8bf   :  { %v1312_v24 = vmul.f32 %v1310_v22, %v1310_v22 }
 0x8c0   :  { %v1311_v27 = vmul.f32 %v1309_v23, %v1309_v23  ;;  %4026 = vmatprep.subr.bf16.mxu0 %v4025_v0 }
 0x8c1   :  { %v1316_v31 = vsel %vm279_vm2, %v1312_v24, 0.0  ;;  %4028 = vmatpush3.bf16.msra.mxu0 %v4025_v0  ;;  %v4041_v0 = vpack.c.bf16 %v3199_v15, %v3198_v14 }
 0x8c2   :  { %1317 = vadd.xlane.f32.xlu0 %v1316_v31  ;;  %v1313_v26 = vsel %vm279_vm2, %v1311_v27, 0.0  ;;  %4030 = vmatprep.subr.bf16.mxu0 %v4029_v18 }
 0x8c3   :  { %1314 = vadd.xlane.f32.xlu1 %v1313_v26 }
 0x8c5   :  { %4032 = vmatpush3.bf16.msra.mxu0 %v4029_v18  ;;  %v3200_v18 = vld [vmem:[%s5569_s3 + $0x90] sm:$0xff] }
 0x8c6   :  { %4042 = vmatprep.subr.bf16.mxu0 %v4041_v0 }
 0x94f   :  { %v1318_v44 = vpop.xlane.xlu0 %1317 }
 0x950   :  { %v1320_v45 = vmul.f32 0.03125, %v1318_v44  ;;  %v1315_v39 = vpop.xlane.xlu1 %1314  ;;  %v3179_v44 = vld [vmem:[%s5521_s19] ss:$0 sm:$0xff] }
 0x951   :  { %v1319_v25 = vmul.f32 0.03125, %v1315_v39 }
 0x952   :  { %v1322_v52 = vadd.f32 1e-12, %v1320_v45 }
 0x953   :  { %v1321_v40 = vadd.f32 1e-12, %v1319_v25 }
 0x954   :  { %4210 = vrsqrt.f32 %v1322_v52 }
 0x955   :  { %4212 = vrsqrt.f32 %v1321_v40 }
 0x95e   :  { %v4211_v53 = vpop.eup %4210 }
 0x95f   :  { %v4213_v48 = vpop.eup %4212  ;;  %v1326_v49 = vmul.f32 %v4211_v53, %v1310_v22 }
 0x960   :  { %v1325_v62 = vmul.f32 %v4213_v48, %v1309_v23 }
 0x961   :  { %v1334_v57 = vmul.f32 %v3174_v56, %v1326_v49 }
 0x962   :  { %v1333_v2 = vmul.f32 %v3174_v56, %v1325_v62 }
 0x963   :  { %v1342_v8 = vadd.f32 %v3175_v1, %v1334_v57 }
 0x964   :  { %v1341_v3 = vadd.f32 %v3175_v1, %v1333_v2 }
 0x966   :  { %3687 = vmatprep.mubr.msk.f32.mxu1 %vm279_vm2, %v1341_v3 }
 0x967   :  { %3688 = vmatmul.mubr.msk.f32.vlgmr.msra.gmra.mrb[26].mxu1 %vm279_vm2, %v1342_v8 }
 0xa3a   :  { %v3689_v7 = vpop.f32.mrb[26].mxu1 }
 0xa3b   :  { %v1432_v20 = vadd.f32 %v3689_v7, %v3176_v33  ;;  %v1426_v22 = vpop.f32.mrb[27].mxu1  ;;  %v3201_v7 = vld [vmem:[%s5569_s3 + $0x98] sm:$0xff] }
 0xa3c   :  { %v1427_v23 = vadd.f32 %v3176_v33, %v1426_v22  ;;  %v4037_v33 = vpack.c.bf16 %v3187_v17, %v3186_v11  ;;  %v3212_v22 = vld [vmem:[%s5569_s3 + $0xa0] sm:$0xff] }
 0xa3d   :  { %v1438_v24 = vmul.f32 0.70710677, %v1432_v20  ;;  %v1436_v37 = vmul.f32 0.5, %v1432_v20  ;;  %v4045_v20 = vpack.c.bf16 %v3201_v7, %v3200_v18 }
 0xa3e   :  { %v1437_v27 = vmul.f32 0.70710677, %v1427_v23  ;;  %v1435_v19 = vmul.f32 0.5, %v1427_v23  ;;  %v3213_v23 = vld [vmem:[%s5569_s3 + $0xa8] sm:$0xff] }
 0xa3f   :  { %4214 = verf.f32 %v1438_v24  ;;  %v4049_v24 = vpack.c.bf16 %v3213_v23, %v3212_v22 }
 0xa40   :  { %4216 = verf.f32 %v1437_v27 }
 0xa49   :  { %v4215_v31 = vpop.eup %4214 }
 0xa4a   :  { %v4217_v26 = vpop.eup %4216  ;;  %v1442_v21 = vadd.f32 1.0, %v4215_v31 }
 0xa4b   :  { %v1441_v32 = vadd.f32 1.0, %v4217_v26 }
 0xa4c   :  { %v1444_v43 = vmul.f32 %v1442_v21, %v1436_v37 }
 0xa4d   :  { %v1443_v41 = vmul.f32 %v1441_v32, %v1435_v19 }
 0xa4f   :  { %3706 = vmatprep.mubr.msk.f32.mxu0 %vm981_vm6, %v1443_v41  ;;  %v3182_v41 = vld [vmem:[%s5522_s20] ss:$0 sm:$0xff] }
 0xa50   :  { %3707 = vmatmul.mubr.msk.f32.vlgmr.msra.gmra.mrb[14].mxu0 %vm981_vm6, %v1444_v43 }
 0xa51   :  { %4044 = vmatpush3.bf16.msra.mxu0 %v4041_v0 }
 0xa52   :  { %4046 = vmatprep.subr.bf16.mxu0 %v4045_v20 }
 0xa55   :  { %4048 = vmatpush3.bf16.msra.mxu0 %v4045_v20 }
 0xb23   :  { %v3708_v45 = vpop.f32.mrb[14].mxu0 }
 0xb24   :  { %v1538_v39 = vadd.f32 %v3708_v45, %v3179_v44  ;;  %v1532_v25 = vpop.f32.mrb[15].mxu0 }
 0xb25   :  { %v1533_v52 = vadd.f32 %v3179_v44, %v1532_v25 }
 0xb26   :  { %v1542_v40 = vadd.f32 %v1538_v39, %v1342_v8  ;;  %v3183_v39 = vld [vmem:[%s5523_s21] ss:$0 sm:$0xff] }
 0xb27   :  { %v1541_v53 = vadd.f32 %v1533_v52, %v1341_v3  ;;  %v3184_v3 = vld [vmem:[%s5569_s3 + $0x60] sm:$0xff] }
 0xb28   :  { %v1548_v56 = vsel %vm279_vm2, %v1542_v40, 0.0  ;;  %v4033_v47 = vpack.c.bf16 %v3185_v35, %v3184_v3 }
 0xb29   :  { %1549 = vadd.xlane.f32.xlu0 %v1548_v56  ;;  %v1545_v48 = vsel %vm279_vm2, %v1541_v53, 0.0 }
 0xb2a   :  { %1546 = vadd.xlane.f32.xlu1 %v1545_v48  ;;  %4034 = vmatprep.subr.bf16.mxu1 %v4033_v47 }
 0xb2b   :  { %4036 = vmatpush3.bf16.msra.mxu1 %v4033_v47 }
 0xb2c   :  { %4038 = vmatprep.subr.bf16.mxu1 %v4037_v33 }
 0xb2f   :  { %4040 = vmatpush3.bf16.msra.mxu1 %v4037_v33 }
 0xb30   :  { %4050 = vmatprep.subr.bf16.mxu1 %v4049_v24 }
 0xbb6   :  { %v1550_v49 = vpop.xlane.xlu0 %1549 }
 0xbb7   :  { %v1552_v62 = vmul.f32 0.03125, %v1550_v49  ;;  %v1547_v1 = vpop.xlane.xlu1 %1546 }
 0xbb8   :  { %v1551_v57 = vmul.f32 0.03125, %v1547_v1  ;;  %v5221_v1 = vld [vmem:[%s5570_s27 + $0x3] ss:$0 sm:$0xff] }
 0xbb9   :  { %v1554_v2 = vsub.f32 %v1542_v40, %v1552_v62  ;;  %v3214_v40 = vld [vmem:[%s5569_s3 + $0xb0] sm:$0xff]  ;;  %v3203_v62 = vld [vmem:[%s5570_s27 + $0x4] ss:$0 sm:$0xff] }
 0xbba   :  { %v1553_v9 = vsub.f32 %v1541_v53, %v1551_v57  ;;  %v3215_v53 = vld [vmem:[%s5569_s3 + $0xb8] sm:$0xff] }
 0xbbb   :  { %v1556_v12 = vmul.f32 %v1554_v2, %v1554_v2  ;;  %v4053_v49 = vpack.c.bf16 %v3215_v53, %v3214_v40  ;;  %v4268_v53 = vld [vmem:[%s5571_s29 + $0x8] sm:$0xff] }
 0xbbc   :  { %v1555_v4 = vmul.f32 %v1553_v9, %v1553_v9 }
 0xbbd   :  { %v1560_v13 = vsel %vm279_vm2, %v1556_v12, 0.0 }
 0xbbe   :  { %1561 = vadd.xlane.f32.xlu0 %v1560_v13  ;;  %v1557_v8 = vsel %vm279_vm2, %v1555_v4, 0.0 }
 0xbbf   :  { %1558 = vadd.xlane.f32.xlu1 %v1557_v8 }
 0xc4b   :  { %v1562_v27 = vpop.xlane.xlu0 %1561 }
 0xc4c   :  { %v1564_v31 = vmul.f32 0.03125, %v1562_v27  ;;  %v1559_v26 = vpop.xlane.xlu1 %1558 }
 0xc4d   :  { %v1563_v21 = vmul.f32 0.03125, %v1559_v26 }
 0xc4e   :  { %v1566_v19 = vadd.f32 1e-12, %v1564_v31 }
 0xc4f   :  { %v1565_v32 = vadd.f32 1e-12, %v1563_v21 }
 0xc50   :  { %4218 = vrsqrt.f32 %v1566_v19 }
 0xc51   :  { %4220 = vrsqrt.f32 %v1565_v32 }
 0xc5a   :  { %v4219_v37 = vpop.eup %4218 }
 0xc5b   :  { %v4221_v43 = vpop.eup %4220  ;;  %v1570_v44 = vmul.f32 %v4219_v37, %v1554_v2 }
 0xc5c   :  { %v1569_v45 = vmul.f32 %v4221_v43, %v1553_v9 }
 0xc5d   :  { %v1578_v25 = vmul.f32 %v3182_v41, %v1570_v44  ;;  %v3217_v44 = vld [vmem:[%s5570_s27 + $0x5] ss:$0 sm:$0xff] }
 0xc5e   :  { %v1577_v52 = vmul.f32 %v3182_v41, %v1569_v45 }
 0xc5f   :  { %v5165_v48 = vadd.f32 %v3183_v39, %v1578_v25 }
 0xc60   :  { %v5163_v56 = vadd.f32 %v3183_v39, %v1577_v52 }
 0xc62   :  { %3717 = vmatprep.mubr.msk.f32.mxu1 %vm279_vm2, %v5163_v56  ;;  %3737 = vmatprep.mubr.msk.f32.mxu0 %vm279_vm2, %v5163_v56 }
 0xc63   :  { %3718 = vmatmul.mubr.msk.f32.vlgmr.msra.gmra.mrb[28].mxu1 %vm279_vm2, %v5165_v48  ;;  %3738 = vmatmul.mubr.msk.f32.vlgmr.msra.gmra.mrb[16].mxu0 %vm279_vm2, %v5165_v48 }
 0xc64   :  { %3720 = vmatprep.mubr.msk.f32.mxu1 %vm279_vm2, %v5163_v56  ;;  %3740 = vmatprep.mubr.msk.f32.mxu0 %vm279_vm2, %v5163_v56 }
 0xc65   :  { %4052 = vmatpush3.bf16.msra.mxu1 %v4049_v24 }
 0xc66   :  { %4054 = vmatprep.subr.bf16.mxu1 %v4053_v49 }
 0xc67   :  { %3721 = vmatmul.mubr.msk.f32.gmra.mrb[30].mxu1 %vm279_vm2, %v5165_v48  ;;  %3741 = vmatmul.mubr.msk.f32.gmra.mrb[18].mxu0 %vm279_vm2, %v5165_v48 }
 0xc68   :  { %3723 = vmatprep.mubr.msk.f32.mxu1 %vm279_vm2, %v5163_v56  ;;  %3743 = vmatprep.mubr.msk.f32.mxu0 %vm279_vm2, %v5163_v56 }
 0xc69   :  { %4056 = vmatpush3.bf16.msra.mxu1 %v4053_v49 }
 0xc6b   :  { %3724 = vmatmul.mubr.msk.f32.gmra.mrb[32].mxu1 %vm279_vm2, %v5165_v48  ;;  %3744 = vmatmul.mubr.msk.f32.gmra.mrb[20].mxu0 %vm279_vm2, %v5165_v48 }
 0xc6c   :  { %3726 = vmatprep.mubr.msk.f32.mxu1 %vm279_vm2, %v5163_v56  ;;  %3746 = vmatprep.mubr.msk.f32.mxu0 %vm279_vm2, %v5163_v56 }
 0xc6f   :  { %3727 = vmatmul.mubr.msk.f32.gmra.mrb[34].mxu1 %vm279_vm2, %v5165_v48  ;;  %3747 = vmatmul.mubr.msk.f32.gmra.mrb[22].mxu0 %vm279_vm2, %v5165_v48 }
 0xc70   :  { %3757 = vmatprep.mubr.msk.f32.mxu1 %vm279_vm2, %v5163_v56 }
 0xc73   :  { %3758 = vmatmul.mubr.msk.f32.vlgmr.msra.gmra.mrb[36].mxu1 %vm279_vm2, %v5165_v48 }
 0xc74   :  { %3760 = vmatprep.mubr.msk.f32.mxu1 %vm279_vm2, %v5163_v56 }
 0xc77   :  { %3761 = vmatmul.mubr.msk.f32.gmra.mrb[38].mxu1 %vm279_vm2, %v5165_v48 }
 0xc78   :  { %3763 = vmatprep.mubr.msk.f32.mxu1 %vm279_vm2, %v5163_v56 }
 0xc7b   :  { %3764 = vmatmul.mubr.msk.f32.gmra.mrb[40].mxu1 %vm279_vm2, %v5165_v48 }
 0xc7c   :  { %3766 = vmatprep.mubr.msk.f32.mxu1 %vm279_vm2, %v5163_v56 }
 0xc7f   :  { %3767 = vmatmul.mubr.msk.f32.gmra.mrb[42].mxu1 %vm279_vm2, %v5165_v48 }
 0xd36   :  { %v5223_v57 = vpop.f32.mrb[28].mxu1  ;;  %v3739_v2 = vpop.f32.mrb[16].mxu0 }
 0xd37   :  { %v1804_v9 = vadd.f32 %v3739_v2, %v3203_v62  ;;  %v1672_v12 = vpop.f32.mrb[29].mxu1  ;;  %v1798_v4 = vpop.f32.mrb[17].mxu0 }
 0xd38   :  { %v1673_v13 = vadd.f32 %v5221_v1, %v1672_v12  ;;  %v1799_v8 = vadd.f32 %v3203_v62, %v1798_v4 }
 0xd39   :  { %v1838_v3 = vmul.f32 %v1804_v9, %v4845_v34 }
 0xd3a   :  { %v1711_v35 = vmul.f32 %v1673_v13, %v4852_v38  ;;  %v1837_v14 = vmul.f32 %v1799_v8, %v4852_v38  ;;  %v5229_v47 = vpop.f32.mrb[30].mxu1  ;;  %v3742_v15 = vpop.f32.mrb[18].mxu0  ;;  %v4270_v8 = vld [vmem:[%s5571_s29 + $0x18] sm:$0xff] }
 0xd3b   :  { %v1814_v0 = vadd.f32 %v3742_v15, %v3203_v62  ;;  %v5231_v11 = vpop.f32.mrb[31].mxu1  ;;  %v1808_v17 = vpop.f32.mrb[19].mxu0 }
 0xd3c   :  { %v4057_v18 = vpack.c.bf16 %v1838_v3, %v1837_v14  ;;  %v1809_v33 = vadd.f32 %v3203_v62, %v1808_v17  ;;  %3785 = vmatprep.mubr.msk.f32.mxu0 %vm279_vm2, %v1711_v35  ;;  %v4271_v35 = vld [vmem:[%s5571_s29 + $0x10] sm:$0xff] }
 0xd3d   :  { %v1840_v7 = vmul.f32 %v1814_v0, %v4861_v46 }
 0xd3e   :  { %v1839_v20 = vmul.f32 %v1809_v33, %v4868_v50  ;;  %v5236_v34 = vpop.f32.mrb[32].mxu1  ;;  %v3745_v22 = vpop.f32.mrb[20].mxu0  ;;  %4059 = vmatprep.subr.msk.bf16.mxu0 %vm4912_vm5, %v4057_v18 }
 0xd3f   :  { %v1824_v38 = vadd.f32 %v3745_v22, %v3203_v62  ;;  %v5240_v23 = vpop.f32.mrb[33].mxu1  ;;  %v1818_v24 = vpop.f32.mrb[21].mxu0  ;;  %4062 = vmatpush3.bf16.xpose.msk.msra.mxu0 %vm4912_vm5, %v4057_v18  ;;  %v4273_v22 = vld [vmem:[%s5571_s29 + $0x20] sm:$0xff] }
 0xd40   :  { %v4063_v27 = vpack.c.bf16 %v1840_v7, %v1839_v20  ;;  %v1819_v31 = vadd.f32 %v3203_v62, %v1818_v24  ;;  %v4272_v7 = vld [vmem:[%s5571_s29 + $0x28] sm:$0xff] }
 0xd41   :  { %v1842_v26 = vmul.f32 %v1824_v38, %v4878_v58 }
 0xd42   :  { %v1841_v46 = vmul.f32 %v1819_v31, %v4885_v63  ;;  %v5246_v50 = vpop.f32.mrb[34].mxu1  ;;  %v3748_v21 = vpop.f32.mrb[22].mxu0  ;;  %4065 = vmatprep.subr.msk.bf16.mxu0 %vm4912_vm5, %v4063_v27 }
 0xd43   :  { %v1834_v19 = vadd.f32 %v3748_v21, %v3203_v62  ;;  %v5250_v32 = vpop.f32.mrb[35].mxu1  ;;  %v1828_v37 = vpop.f32.mrb[23].mxu0  ;;  %v4274_v21 = vld [vmem:[%s5571_s29 + $0x38] sm:$0xff] }
 0xd44   :  { %v4069_v41 = vpack.c.bf16 %v1842_v26, %v1841_v46  ;;  %v1829_v43 = vadd.f32 %v3203_v62, %v1828_v37 }
 0xd45   :  { %v1844_v58 = vmul.f32 %v1834_v19, %v4894_v6  ;;  %v4269_v6 = vld [vmem:[%s5571_s29] sm:$0xff] }
 0xd46   :  { %v1843_v63 = vmul.f32 %v1829_v43, %v4901_v10  ;;  %v3759_v45 = vpop.f32.mrb[36].mxu1 }
 0xd47   :  { %v1930_v39 = vadd.f32 %v3759_v45, %v3217_v44  ;;  %v1924_v25 = vpop.f32.mrb[37].mxu1  ;;  %4068 = vmatpush3.bf16.xpose.msk.msra.mxu0 %vm4912_vm5, %v4063_v27 }
 0xd48   :  { %v4075_v52 = vpack.c.bf16 %v1844_v58, %v1843_v63  ;;  %v1925_v40 = vadd.f32 %v3217_v44, %v1924_v25  ;;  %4071 = vmatprep.subr.msk.bf16.mxu0 %vm4912_vm5, %v4069_v41  ;;  %v1688_v63 = vadd.f32 %v5229_v47, %v5221_v1  ;;  %v4275_v25 = vld [vmem:[%s5571_s29 + $0x30] sm:$0xff]  ;;  %s4453_s29 = smov [#allocation13]  }
 0xd49   :  { %v1964_v49 = vmul.f32 %v4268_v53, %v1930_v39 }
 0xd4a   :  { %v1963_v62 = vmul.f32 %v4269_v6, %v1925_v40  ;;  %v3762_v2 = vpop.f32.mrb[38].mxu1  ;;  %v1714_v36 = vmul.f32 %v4270_v8, %v1688_v63 }
 0xd4b   :  { %v1940_v9 = vadd.f32 %v3762_v2, %v3217_v44  ;;  %v1934_v12 = vpop.f32.mrb[39].mxu1 }
 0xd4c   :  { %v1935_v4 = vadd.f32 %v3217_v44, %v1934_v12  ;;  %v4081_v13 = vpack.c.bf16 %v1964_v49, %v1963_v62 }
 0xd4d   :  { %v1966_v3 = vmul.f32 %v4270_v8, %v1940_v9 }
 0xd4e   :  { %v1965_v14 = vmul.f32 %v4271_v35, %v1935_v4  ;;  %v3765_v15 = vpop.f32.mrb[40].mxu1  ;;  %4082 = vmatprep.subr.bf16.mxu1 %v4081_v13 }
 0xd4f   :  { %v1950_v0 = vadd.f32 %v3765_v15, %v3217_v44  ;;  %v1944_v17 = vpop.f32.mrb[41].mxu1  ;;  %4074 = vmatpush3.bf16.xpose.msk.msra.mxu0 %vm4912_vm5, %v4069_v41  ;;  %4084 = vmatpush3.bf16.msra.mxu1 %v4081_v13  ;;  %v1678_v41 = vadd.f32 %v5223_v57, %v5221_v1  ;;  %v1698_v57 = vadd.f32 %v5236_v34, %v5221_v1 }
 0xd50   :  { %v1945_v18 = vadd.f32 %v3217_v44, %v1944_v17  ;;  %4077 = vmatprep.subr.msk.bf16.mxu0 %vm4912_vm5, %v4075_v52  ;;  %v4085_v33 = vpack.c.bf16 %v1966_v3, %v1965_v14 }
 0xd51   :  { %v1968_v20 = vmul.f32 %v4272_v7, %v1950_v0  ;;  %v1712_v58 = vmul.f32 %v4268_v53, %v1678_v41  ;;  %v1716_v47 = vmul.f32 %v4272_v7, %v1698_v57 }
 0xd52   :  { %v1967_v38 = vmul.f32 %v4273_v22, %v1945_v18  ;;  %v3768_v24 = vpop.f32.mrb[42].mxu1  ;;  %4086 = vmatprep.subr.bf16.mxu1 %v4085_v33 }
 0xd53   :  { %v1960_v27 = vadd.f32 %v3768_v24, %v3217_v44  ;;  %v1954_v31 = vpop.f32.mrb[43].mxu1  ;;  %4088 = vmatpush3.bf16.msra.mxu1 %v4085_v33 }
 0xd54   :  { %v1955_v26 = vadd.f32 %v3217_v44, %v1954_v31  ;;  %v4089_v46 = vpack.c.bf16 %v1968_v20, %v1967_v38  ;;  %v1683_v44 = vadd.f32 %v5221_v1, %v5231_v11  ;;  %v1703_v11 = vadd.f32 %v5221_v1, %v5250_v32 }
 0xd55   :  { %v1970_v19 = vmul.f32 %v4274_v21, %v1960_v27 }
 0xd56   :  { %v1969_v37 = vmul.f32 %v1955_v26, %v4901_v10  ;;  %4090 = vmatprep.subr.bf16.mxu1 %v4089_v46  ;;  %v1713_v45 = vmul.f32 %v4271_v35, %v1683_v44  ;;  %v1693_v10 = vadd.f32 %v5221_v1, %v5240_v23  ;;  %v1708_v23 = vadd.f32 %v5246_v50, %v5221_v1 }
 0xd57   :  { %4080 = vmatpush3.bf16.xpose.msk.msra.mxu0 %vm4912_vm5, %v4075_v52  ;;  %4092 = vmatpush3.bf16.msra.mxu1 %v4089_v46  ;;  %v1717_v52 = vmul.f32 %v4275_v25, %v1703_v11 }
 0xd58   :  { %v4093_v43 = vpack.c.bf16 %v1970_v19, %v1969_v37  ;;  %v1715_v39 = vmul.f32 %v4273_v22, %v1693_v10  ;;  %v1718_v34 = vmul.f32 %v4274_v21, %v1708_v23 }
 0xd5a   :  { %4094 = vmatprep.subr.bf16.mxu1 %v4093_v43 }
 0xd5b   :  { %4096 = vmatpush3.bf16.msra.mxu1 %v4093_v43 }
 0xd5e   :  { %3786 = vmatmul.mubr.msk.f32.vlgmr.msra.gmra.mrb[24].mxu0 %vm279_vm2, %v1712_v58 }
 0xd5f   :  { %3788 = vmatprep.mubr.msk.f32.mxu0 %vm279_vm2, %v1713_v45 }
 0xd62   :  { %3789 = vmatmul.mubr.msk.f32.gmra.mrb[26].mxu0 %vm279_vm2, %v1714_v36 }
 0xd63   :  { %3791 = vmatprep.mubr.msk.f32.mxu0 %vm279_vm2, %v1715_v39 }
 0xd66   :  { %3792 = vmatmul.mubr.msk.f32.gmra.mrb[28].mxu0 %vm279_vm2, %v1716_v47 }
 0xd67   :  { %3794 = vmatprep.mubr.msk.f32.mxu0 %vm279_vm2, %v1717_v52 }
 0xd6a   :  { %3795 = vmatmul.mubr.msk.f32.gmra.mrb[30].mxu0 %vm279_vm2, %v1718_v34 }
 0xe31   :  { %v3787_v32 = vpop.f32.mrb[24].mxu0 }
 0xe32   :  { %v2125_v40 = vmul.f32 0.35355338, %v3787_v32  ;;  %v2085_v53 = vpop.f32.mrb[25].mxu0 }
 0xe33   :  { %v2124_v49 = vmul.f32 0.35355338, %v2085_v53 }
 0xe34   :  { %v2133_v6 = vadd.f32 %v2125_v40, %v4979_v29 }
 0xe35   :  { %v3790_v62 = vpop.f32.mrb[26].mxu0  ;;  %v2132_v1 = vadd.f32 %v2124_v49, %v4976_v30 }
 0xe36   :  { %v2127_v50 = vmul.f32 0.35355338, %v3790_v62  ;;  %v2095_v2 = vpop.f32.mrb[27].mxu0  ;;  %v2143_v9 = vsel %vm981_vm6, %v2133_v6, -inf }
 0xe37   :  { %v2126_v12 = vmul.f32 0.35355338, %v2095_v2  ;;  %2144 = vmax.xlane.f32.xlu0 %v2143_v9  ;;  %v2140_v4 = vsel %vm981_vm6, %v2132_v1, -inf }
 0xe38   :  { %2141 = vmax.xlane.f32.xlu1 %v2140_v4  ;;  %v2135_v13 = vadd.f32 %v2127_v50, %v4996_v54 }
 0xe39   :  { %v3793_v8 = vpop.f32.mrb[28].mxu0  ;;  %v2134_v3 = vadd.f32 %v2126_v12, %v4986_v42 }
 0xe3a   :  { %v2129_v35 = vmul.f32 0.35355338, %v3793_v8  ;;  %v2105_v14 = vpop.f32.mrb[29].mxu0  ;;  %v2149_v29 = vsel %vm981_vm6, %v2135_v13, -inf }
 0xe3b   :  { %v2128_v15 = vmul.f32 0.35355338, %v2105_v14  ;;  %2150 = vmax.xlane.f32.xlu0 %v2149_v29  ;;  %v2146_v30 = vsel %vm981_vm6, %v2134_v3, -inf }
 0xe3c   :  { %2147 = vmax.xlane.f32.xlu1 %v2146_v30  ;;  %v2137_v0 = vadd.f32 %v2129_v35, %v5014_v51  ;;  %v3251_v35 = vld [vmem:[%s5575_s8 + $0x28] sm:$0xff] }
 0xe3d   :  { %v3796_v17 = vpop.f32.mrb[30].mxu0  ;;  %v2136_v18 = vadd.f32 %v2128_v15, %v5006_v5 }
 0xe3e   :  { %v2131_v33 = vmul.f32 0.35355338, %v3796_v17  ;;  %v2115_v7 = vpop.f32.mrb[31].mxu0  ;;  %v2155_v54 = vsel %vm981_vm6, %v2137_v0, -inf }
 0xe3f   :  { %v2130_v20 = vmul.f32 0.35355338, %v2115_v7  ;;  %2156 = vmax.xlane.f32.xlu0 %v2155_v54  ;;  %v2152_v42 = vsel %vm981_vm6, %v2136_v18, -inf  ;;  %v3253_v7 = vld [vmem:[%s5575_s8 + $0x38] sm:$0xff] }
 0xe40   :  { %2153 = vmax.xlane.f32.xlu1 %v2152_v42  ;;  %v2139_v22 = vadd.f32 %v2131_v33, %v4998_v60  ;;  %v3252_v33 = vld [vmem:[%s5575_s8 + $0x30] sm:$0xff] }
 0xe41   :  { %v2138_v38 = vadd.f32 %v2130_v20, %v5021_v59 }
 0xe42   :  { %v2161_v24 = vsel %vm981_vm6, %v2139_v22, -inf }
 0xe43   :  { %2162 = vmax.xlane.f32.xlu0 %v2161_v24  ;;  %v2158_v51 = vsel %vm981_vm6, %v2138_v38, -inf }
 0xe44   :  { %2159 = vmax.xlane.f32.xlu1 %v2158_v51 }
 0xec4   :  { %v2145_v5 = vpop.xlane.xlu0 %2144 }
 0xec5   :  { %v2165_v27 = vsub.f32 %v2133_v6, %v2145_v5  ;;  %v2142_v31 = vpop.xlane.xlu1 %2141 }
 0xec6   :  { %v2164_v26 = vsub.f32 %v2132_v1, %v2142_v31 }
 0xec7   :  { %v2174_v46 = vmul.f32 1.442695, %v2165_v27 }
 0xec8   :  { %v2172_v21 = vmul.f32 1.442695, %v2164_v26  ;;  %v2151_v19 = vpop.xlane.xlu0 %2150 }
 0xec9   :  { %4222 = vpow2.f32 %v2174_v46  ;;  %v2167_v37 = vsub.f32 %v2135_v13, %v2151_v19  ;;  %v2148_v41 = vpop.xlane.xlu1 %2147 }
 0xeca   :  { %4224 = vpow2.f32 %v2172_v21  ;;  %v2166_v60 = vsub.f32 %v2134_v3, %v2148_v41  ;;  %v3250_v3 = vld [vmem:[%s5575_s8 + $0x20] sm:$0xff] }
 0xecb   :  { %v2178_v43 = vmul.f32 1.442695, %v2167_v37  ;;  %v4097_v14 = vpack.c.bf16 %v3251_v35, %v3250_v3 }
 0xecc   :  { %v2176_v59 = vmul.f32 1.442695, %v2166_v60  ;;  %v2157_v44 = vpop.xlane.xlu0 %2156 }
 0xecd   :  { %4226 = vpow2.f32 %v2178_v43  ;;  %v2169_v58 = vsub.f32 %v2137_v0, %v2157_v44  ;;  %v2154_v63 = vpop.xlane.xlu1 %2153  ;;  %4098 = vmatprep.subr.bf16.mxu1 %v4097_v14 }
 0xece   :  { %4228 = vpow2.f32 %v2176_v59  ;;  %v2168_v45 = vsub.f32 %v2136_v18, %v2154_v63  ;;  %v3255_v63 = vld [vmem:[%s5515_s13 + $0x1] ss:$0 sm:$0xff] }
 0xecf   :  { %v2182_v10 = vmul.f32 1.442695, %v2169_v58 }
 0xed0   :  { %v2180_v36 = vmul.f32 1.442695, %v2168_v45  ;;  %v2163_v57 = vpop.xlane.xlu0 %2162 }
 0xed1   :  { %4230 = vpow2.f32 %v2182_v10  ;;  %v2171_v39 = vsub.f32 %v2139_v22, %v2163_v57  ;;  %v2160_v11 = vpop.xlane.xlu1 %2159 }
 0xed2   :  { %4232 = vpow2.f32 %v2180_v36  ;;  %v2170_v47 = vsub.f32 %v2138_v38, %v2160_v11  ;;  %v4101_v38 = vpack.c.bf16 %v3253_v7, %v3252_v33 }
 0xed3   :  { %v4223_v23 = vpop.eup %4222  ;;  %v2186_v25 = vmul.f32 1.442695, %v2171_v39 }
 0xed4   :  { %v4225_v52 = vpop.eup %4224  ;;  %v2184_v34 = vmul.f32 1.442695, %v2170_v47  ;;  %v2191_v32 = vsel %vm981_vm6, %v4223_v23, 0.0 }
 0xed5   :  { %4234 = vpow2.f32 %v2186_v25  ;;  %2192 = vadd.xlane.f32.xlu0 %v2191_v32  ;;  %v2188_v40 = vsel %vm981_vm6, %v4225_v52, 0.0 }
 0xed6   :  { %4236 = vpow2.f32 %v2184_v34  ;;  %2189 = vadd.xlane.f32.xlu1 %v2188_v40 }
 0xed7   :  { %v4227_v53 = vpop.eup %4226 }
 0xed8   :  { %v4229_v49 = vpop.eup %4228  ;;  %v2197_v6 = vsel %vm981_vm6, %v4227_v53, 0.0 }
 0xed9   :  { %2198 = vadd.xlane.f32.xlu0 %v2197_v6  ;;  %v2194_v62 = vsel %vm981_vm6, %v4229_v49, 0.0 }
 0xeda   :  { %2195 = vadd.xlane.f32.xlu1 %v2194_v62 }
 0xedb   :  { %v4231_v1 = vpop.eup %4230 }
 0xedc   :  { %v4233_v50 = vpop.eup %4232  ;;  %v2203_v2 = vsel %vm981_vm6, %v4231_v1, 0.0 }
 0xedd   :  { %2204 = vadd.xlane.f32.xlu0 %v2203_v2  ;;  %v2200_v9 = vsel %vm981_vm6, %v4233_v50, 0.0  ;;  %v3264_v2 = vld [vmem:[%s5518_s16 + $0x30] sm:$0xff] }
 0xede   :  { %2201 = vadd.xlane.f32.xlu1 %v2200_v9  ;;  %v3265_v9 = vld [vmem:[%s5518_s16 + $0x38] sm:$0xff] }
 0xedf   :  { %v4235_v12 = vpop.eup %4234 }
 0xee0   :  { %v4237_v4 = vpop.eup %4236  ;;  %v2209_v13 = vsel %vm981_vm6, %v4235_v12, 0.0 }
 0xee1   :  { %2210 = vadd.xlane.f32.xlu0 %v2209_v13  ;;  %v2206_v8 = vsel %vm981_vm6, %v4237_v4, 0.0 }
 0xee2   :  { %2207 = vadd.xlane.f32.xlu1 %v2206_v8 }
 0xf62   :  { %v2193_v29 = vpop.xlane.xlu0 %2192 }
 0xf63   :  { %4238 = vrcp.f32 %v2193_v29  ;;  %v2190_v15 = vpop.xlane.xlu1 %2189 }
 0xf64   :  { %4240 = vrcp.f32 %v2190_v15  ;;  %v3260_v15 = vld [vmem:[%s5516_s14 + $0x1] ss:$0 sm:$0xff] }
 0xf66   :  { %v2199_v0 = vpop.xlane.xlu0 %2198 }
 0xf67   :  { %v2196_v30 = vpop.xlane.xlu1 %2195 }
 0xf68   :  { %4242 = vrcp.f32 %v2196_v30 }
 0xf69   :  { %4244 = vrcp.f32 %v2199_v0 }
 0xf6a   :  { %v2205_v22 = vpop.xlane.xlu0 %2204 }
 0xf6b   :  { %v2202_v17 = vpop.xlane.xlu1 %2201 }
 0xf6c   :  { %4246 = vrcp.f32 %v2202_v17 }
 0xf6d   :  { %v4239_v18 = vpop.eup %4238  ;;  %4248 = vrcp.f32 %v2205_v22  ;;  %v3271_v22 = vld [vmem:[%s5520_s18 + $0x48] sm:$0xff] }
 0xf6e   :  { %v4241_v54 = vpop.eup %4240  ;;  %v2215_v42 = vmul.f32 %v4239_v18, %v4223_v23  ;;  %v2211_v26 = vpop.xlane.xlu0 %2210  ;;  %v3261_v18 = vld [vmem:[%s5517_s15 + $0x1] ss:$0 sm:$0xff] }
 0xf6f   :  { %v2213_v20 = vmul.f32 %v4241_v54, %v4225_v52  ;;  %v2208_v24 = vpop.xlane.xlu1 %2207 }
 0xf70   :  { %4250 = vrcp.f32 %v2208_v24  ;;  %v3272_v24 = vld [vmem:[%s5520_s18 + $0x50] sm:$0xff] }
 0xf71   :  { %3813 = vmatprep.mubr.msk.f32.mxu1 %vm981_vm6, %v2213_v20  ;;  %4252 = vrcp.f32 %v2211_v26 }
 0xf72   :  { %v4243_v51 = vpop.eup %4242  ;;  %3814 = vmatmul.mubr.msk.f32.vlgmr.msra.gmra.mrb[44].mxu1 %vm981_vm6, %v2215_v42  ;;  %v3270_v42 = vld [vmem:[%s5520_s18 + $0x40] sm:$0xff] }
 0xf73   :  { %v2217_v5 = vmul.f32 %v4243_v51, %v4229_v49  ;;  %4100 = vmatpush3.bf16.msra.mxu1 %v4097_v14  ;;  %v4245_v27 = vpop.eup %4244  ;;  %v3273_v51 = vld [vmem:[%s5520_s18 + $0x58] sm:$0xff] }
 0xf74   :  { %4102 = vmatprep.subr.bf16.mxu1 %v4101_v38  ;;  %v2219_v46 = vmul.f32 %v4245_v27, %v4227_v53  ;;  %v3274_v27 = vld [vmem:[%s5520_s18 + $0x60] sm:$0xff] }
 0xf75   :  { %3816 = vmatprep.mubr.msk.f32.mxu1 %vm981_vm6, %v2217_v5  ;;  %v4117_v5 = vpack.c.bf16 %v3273_v51, %v3272_v24  ;;  %v3285_v24 = vld [vmem:[%s5523_s21 + $0x1] ss:$0 sm:$0xff] }
 0xf76   :  { %v4247_v31 = vpop.eup %4246 }
 0xf77   :  { %4104 = vmatpush3.bf16.msra.mxu1 %v4101_v38  ;;  %v2221_v21 = vmul.f32 %v4247_v31, %v4233_v50  ;;  %v4249_v19 = vpop.eup %4248  ;;  %v4113_v38 = vpack.c.bf16 %v3271_v22, %v3270_v42  ;;  %v3275_v31 = vld [vmem:[%s5520_s18 + $0x68] sm:$0xff] }
 0xf78   :  { %v2223_v41 = vmul.f32 %v4249_v19, %v4231_v1  ;;  %v3263_v1 = vld [vmem:[%s5518_s16 + $0x28] sm:$0xff]  ;;  %v4121_v26 = vpack.c.bf16 %v3275_v31, %v3274_v27 }
 0xf79   :  { %4114 = vmatprep.subr.bf16.mxu0 %v4113_v38 }
 0xf7a   :  { %3817 = vmatmul.mubr.msk.f32.gmra.mrb[44].mxu1 %vm981_vm6, %v2219_v46  ;;  %v4251_v37 = vpop.eup %4250  ;;  %4116 = vmatpush3.bf16.msra.mxu0 %v4113_v38  ;;  %v3276_v46 = vld [vmem:[%s5520_s18 + $0x70] sm:$0xff] }
 0xf7b   :  { %3819 = vmatprep.mubr.msk.f32.mxu1 %vm981_vm6, %v2221_v21  ;;  %v2225_v60 = vmul.f32 %v4251_v37, %v4237_v4  ;;  %v4253_v43 = vpop.eup %4252  ;;  %4118 = vmatprep.subr.bf16.mxu0 %v4117_v5  ;;  %v3277_v21 = vld [vmem:[%s5520_s18 + $0x78] sm:$0xff]  ;;  %v3267_v37 = vld [vmem:[%s5519_s17 + $0x1] ss:$0 sm:$0xff] }
 0xf7c   :  { %v2227_v59 = vmul.f32 %v4253_v43, %v4235_v12  ;;  %v4109_v12 = vpack.c.bf16 %v3265_v9, %v3264_v2  ;;  %v4125_v19 = vpack.c.bf16 %v3277_v21, %v3276_v46 }
 0xf7e   :  { %4120 = vmatpush3.bf16.msra.mxu0 %v4117_v5  ;;  %v2757_v5 = vmul.u32 8, %v4967_v16  ;;  %v2919_v16 = vld [vmem:[%s5526_s24 + $0x8] sm:$0xff] }
 0xf7f   :  { %4122 = vmatprep.subr.bf16.mxu0 %v4121_v26 }
 0xf80   :  { %vm2758_vm7 = vcmp.eq.s32.totalorder %v4732_v28, %v2757_v5  ;;  %v2918_v28 = vld [vmem:[%s5526_s24] sm:$0xff] }
 0xf81   :  { %v2759_v21 = vsel %vm2758_vm7, 1.0, %v4452_v61 }
 0xf82   :  { %3820 = vmatmul.mubr.msk.f32.gmra.mrb[44].mxu1 %vm981_vm6, %v2223_v41  ;;  %4124 = vmatpush3.bf16.msra.mxu0 %v4121_v26 }
 0xf83   :  { %3822 = vmatprep.mubr.msk.f32.mxu1 %vm981_vm6, %v2225_v60  ;;  %4126 = vmatprep.subr.bf16.mxu0 %v4125_v19 }
 0xf86   :  { %4128 = vmatpush3.bf16.msra.mxu0 %v4125_v19 }
 0xf87   :  { %4132 = vmatprep.subr.bf16.mxu0 %v4450_v55 }
 0xf8a   :  { %3823 = vmatmul.mubr.msk.f32.gmra.mrb[44].mxu1 %vm981_vm6, %v2227_v59 }
0x105d   :  { %v3824_v44 = vpop.f32.mrb[44].mxu1 }
0x105e   :  { %v2348_v58 = vpop.f32.mrb[45].mxu1 }
0x105f   :  { %3833 = vmatprep.mubr.msk.f32.mxu1 %vm279_vm2, %v2348_v58 }
0x1060   :  { %3834 = vmatmul.mubr.msk.f32.vlgmr.msra.gmra.mrb[46].mxu1 %vm279_vm2, %v3824_v44 }
0x1133   :  { %v3835_v45 = vpop.f32.mrb[46].mxu1 }
0x1134   :  { %v2454_v10 = vadd.f32 %v3835_v45, %v3255_v63  ;;  %v2448_v36 = vpop.f32.mrb[47].mxu1 }
0x1135   :  { %v2449_v57 = vadd.f32 %v3255_v63, %v2448_v36 }
0x1136   :  { %v2458_v39 = vadd.f32 %v2454_v10, %v5165_v48 }
0x1137   :  { %v2457_v11 = vadd.f32 %v2449_v57, %v5163_v56  ;;  %v3262_v56 = vld [vmem:[%s5518_s16 + $0x20] sm:$0xff]  ;;  %s3092_s16 = sshll.u32 %s4453_s29, 4  ;;  %s3093_s16 = int_to_ptr.vmem [resolvable:$true] %s3092_s16 }
0x1138   :  { %v2466_v47 = vsel %vm279_vm2, %v2458_v39, 0.0  ;;  %v4105_v50 = vpack.c.bf16 %v3263_v1, %v3262_v56  ;;  %p4413_p7 = scmp.lt.s32.totalorder %s3093_s16, %s3093_s16 }
0x1139   :  { %2467 = vadd.xlane.f32.xlu0 %v2466_v47  ;;  %v2463_v23 = vsel %vm279_vm2, %v2457_v11, 0.0 }
0x113a   :  { %2464 = vadd.xlane.f32.xlu1 %v2463_v23  ;;  %4106 = vmatprep.subr.bf16.mxu1 %v4105_v50  ;;  %v3279_v23 = vld [vmem:[%s5521_s19 + $0x1] ss:$0 sm:$0xff] }
0x113b   :  { %4108 = vmatpush3.bf16.msra.mxu1 %v4105_v50 }
0x113c   :  { %4110 = vmatprep.subr.bf16.mxu1 %v4109_v12 }
0x113f   :  { %4112 = vmatpush3.bf16.msra.mxu1 %v4109_v12 }
0x1140   :  { %4129 = vmatprep.subr.bf16.mxu1 %v4450_v55 }
0x11c6   :  { %v2468_v25 = vpop.xlane.xlu0 %2467 }
0x11c7   :  { %v2470_v52 = vmul.f32 0.03125, %v2468_v25  ;;  %v2465_v34 = vpop.xlane.xlu1 %2464 }
0x11c8   :  { %v2469_v32 = vmul.f32 0.03125, %v2465_v34 }
0x11c9   :  { %v2472_v40 = vsub.f32 %v2458_v39, %v2470_v52 }
0x11ca   :  { %v2471_v53 = vsub.f32 %v2457_v11, %v2469_v32 }
0x11cb   :  { %v2474_v49 = vmul.f32 %v2472_v40, %v2472_v40 }
0x11cc   :  { %v2473_v6 = vmul.f32 %v2471_v53, %v2471_v53 }
0x11cd   :  { %v2478_v62 = vsel %vm279_vm2, %v2474_v49, 0.0 }
0x11ce   :  { %2479 = vadd.xlane.f32.xlu0 %v2478_v62  ;;  %v2475_v48 = vsel %vm279_vm2, %v2473_v6, 0.0 }
0x11cf   :  { %2476 = vadd.xlane.f32.xlu1 %v2475_v48 }
0x125b   :  { %v2480_v4 = vpop.xlane.xlu0 %2479 }
0x125c   :  { %v2482_v13 = vmul.f32 0.03125, %v2480_v4  ;;  %v2477_v8 = vpop.xlane.xlu1 %2476 }
0x125d   :  { %v2481_v3 = vmul.f32 0.03125, %v2477_v8  ;;  %v2833_v8 = vld [vmem:[%s5524_s22] sm:$0xff] }
0x125e   :  { %v2484_v35 = vadd.f32 1e-12, %v2482_v13 }
0x125f   :  { %v2483_v14 = vadd.f32 1e-12, %v2481_v3  ;;  %v2834_v3 = vld [vmem:[%s5524_s22 + $0x8] sm:$0xff] }
0x1260   :  { %4254 = vrsqrt.f32 %v2484_v35  ;;  %v2835_v35 = vld [vmem:[%s5524_s22 + $0x10] sm:$0xff] }
0x1261   :  { %4256 = vrsqrt.f32 %v2483_v14  ;;  %v4133_v14 = vpack.c.bf16 %v2834_v3, %v2833_v8 }
0x126a   :  { %v4255_v29 = vpop.eup %4254 }
0x126b   :  { %v4257_v30 = vpop.eup %4256  ;;  %v2488_v0 = vmul.f32 %v4255_v29, %v2472_v40  ;;  %v2836_v29 = vld [vmem:[%s5524_s22 + $0x18] sm:$0xff] }
0x126c   :  { %v2487_v17 = vmul.f32 %v4257_v30, %v2471_v53 }
0x126d   :  { %v2496_v33 = vmul.f32 %v3260_v15, %v2488_v0 }
0x126e   :  { %v2495_v7 = vmul.f32 %v3260_v15, %v2487_v17  ;;  %v4136_v15 = vpack.c.bf16 %v2836_v29, %v2835_v35 }
0x126f   :  { %v2504_v20 = vadd.f32 %v3261_v18, %v2496_v33 }
0x1270   :  { %v2503_v54 = vadd.f32 %v3261_v18, %v2495_v7 }
0x1272   :  { %3844 = vmatprep.mubr.msk.f32.mxu1 %vm279_vm2, %v2503_v54 }
0x1273   :  { %3845 = vmatmul.mubr.msk.f32.vlgmr.msra.gmra.mrb[48].mxu1 %vm279_vm2, %v2504_v20 }
0x1274   :  { %3870 = vmatprep.mubr.msk.f32.mxu1 %vm4451_vm3, %v4452_v61 }
0x1346   :  { %v3846_v41 = vpop.f32.mrb[48].mxu1 }
0x1347   :  { %v2596_v60 = vadd.f32 %v3846_v41, %v3267_v37  ;;  %v2590_v43 = vpop.f32.mrb[49].mxu1  ;;  %v2920_v41 = vld [vmem:[%s5526_s24 + $0x10] sm:$0xff] }
0x1348   :  { %v2591_v59 = vadd.f32 %v3267_v37, %v2590_v43  ;;  %v2921_v43 = vld [vmem:[%s5526_s24 + $0x18] sm:$0xff] }
0x1349   :  { %v2602_v44 = vmul.f32 0.70710677, %v2596_v60  ;;  %v2600_v39 = vmul.f32 0.5, %v2596_v60  ;;  %v4139_v60 = vpack.c.bf16 %v2919_v16, %v2918_v28 }
0x134a   :  { %v2601_v58 = vmul.f32 0.70710677, %v2591_v59  ;;  %v2599_v36 = vmul.f32 0.5, %v2591_v59  ;;  %v4142_v59 = vpack.c.bf16 %v2921_v43, %v2920_v41 }
0x134b   :  { %4258 = verf.f32 %v2602_v44 }
0x134c   :  { %4260 = verf.f32 %v2601_v58 }
0x1355   :  { %v4259_v63 = vpop.eup %4258 }
0x1356   :  { %v4261_v45 = vpop.eup %4260  ;;  %v2606_v10 = vadd.f32 1.0, %v4259_v63 }
0x1357   :  { %v2605_v57 = vadd.f32 1.0, %v4261_v45 }
0x1358   :  { %v2608_v47 = vmul.f32 %v2606_v10, %v2600_v39  ;;  %v3002_v10 = vld [vmem:[%s5528_s26] sm:$0xff] }
0x1359   :  { %v2607_v11 = vmul.f32 %v2605_v57, %v2599_v36 }
0x135b   :  { %3863 = vmatprep.mubr.msk.f32.mxu0 %vm981_vm6, %v2607_v11 }
0x135c   :  { %3864 = vmatmul.mubr.msk.f32.vlgmr.msra.gmra.mrb[32].mxu0 %vm981_vm6, %v2608_v47 }
0x135d   :  { %3881 = vmatprep.mubr.msk.f32.mxu0 %vm4451_vm3, %v4452_v61  ;;  %4134 = vmatpush3.bf16.msra.mxu0 %v4133_v14 }
0x135e   :  { %4135 = vmatprep.subr.bf16.mxu0 %v4450_v55 }
0x1361   :  { %4137 = vmatpush3.bf16.msra.mxu0 %v4136_v15 }
0x1362   :  { %4144 = vmatprep.subr.bf16.mxu0 %v4450_v55 }
0x142f   :  { %v3865_v25 = vpop.f32.mrb[32].mxu0 }
0x1430   :  { %v2704_v52 = vadd.f32 %v3865_v25, %v3279_v23  ;;  %v2698_v34 = vpop.f32.mrb[33].mxu0 }
0x1431   :  { %v2699_v32 = vadd.f32 %v3279_v23, %v2698_v34  ;;  %v3291_v23 = vld [vmem:[%s5577_s5] ss:$0 sm:$0xff] }
0x1432   :  { %v2708_v40 = vadd.f32 %v2704_v52, %v2504_v20  ;;  %v3284_v20 = vld [vmem:[%s5522_s20 + $0x1] ss:$0 sm:$0xff] }
0x1433   :  { %v2707_v53 = vadd.f32 %v2699_v32, %v2503_v54 }
0x1434   :  { %v2716_v49 = vsel %vm279_vm2, %v2708_v40, 0.0 }
0x1435   :  { %2717 = vadd.xlane.f32.xlu0 %v2716_v49  ;;  %v2713_v6 = vsel %vm279_vm2, %v2707_v53, 0.0 }
0x1436   :  { %2714 = vadd.xlane.f32.xlu1 %v2713_v6 }
0x14c2   :  { %v2718_v62 = vpop.xlane.xlu0 %2717 }
0x14c3   :  { %v2720_v48 = vmul.f32 0.03125, %v2718_v62  ;;  %v2715_v56 = vpop.xlane.xlu1 %2714 }
0x14c4   :  { %v2719_v1 = vmul.f32 0.03125, %v2715_v56 }
0x14c5   :  { %v2722_v50 = vsub.f32 %v2708_v40, %v2720_v48 }
0x14c6   :  { %v2721_v2 = vsub.f32 %v2707_v53, %v2719_v1 }
0x14c7   :  { %v2724_v9 = vmul.f32 %v2722_v50, %v2722_v50 }
0x14c8   :  { %v2723_v12 = vmul.f32 %v2721_v2, %v2721_v2 }
0x14c9   :  { %v2728_v4 = vsel %vm279_vm2, %v2724_v9, 0.0 }
0x14ca   :  { %2729 = vadd.xlane.f32.xlu0 %v2728_v4  ;;  %v2725_v13 = vsel %vm279_vm2, %v2723_v12, 0.0 }
0x14cb   :  { %2726 = vadd.xlane.f32.xlu1 %v2725_v13 }
0x1557   :  { %v2730_v30 = vpop.xlane.xlu0 %2729 }
0x1558   :  { %v2732_v0 = vmul.f32 0.03125, %v2730_v30  ;;  %v2727_v17 = vpop.xlane.xlu1 %2726 }
0x1559   :  { %v2731_v18 = vmul.f32 0.03125, %v2727_v17 }
0x155a   :  { %v2734_v33 = vadd.f32 1e-12, %v2732_v0 }
0x155b   :  { %v2733_v7 = vadd.f32 1e-12, %v2731_v18 }
0x155c   :  { %4262 = vrsqrt.f32 %v2734_v33 }
0x155d   :  { %4264 = vrsqrt.f32 %v2733_v7 }
0x1566   :  { %v4263_v54 = vpop.eup %4262 }
0x1567   :  { %v4265_v42 = vpop.eup %4264  ;;  %v2738_v22 = vmul.f32 %v4263_v54, %v2722_v50 }
0x1568   :  { %v2737_v38 = vmul.f32 %v4265_v42, %v2721_v2 }
0x1569   :  { %v2746_v51 = vmul.f32 %v3284_v20, %v2738_v22 }
0x156a   :  { %v2745_v27 = vmul.f32 %v3284_v20, %v2737_v38 }
0x156b   :  { %v2754_v31 = vadd.f32 %v3285_v24, %v2746_v51 }
0x156c   :  { %v2753_v26 = vadd.f32 %v3285_v24, %v2745_v27 }
0x156e   :  { %v4130_v46 = vpack.c.bf16 %v2754_v31, %v2753_v26 }
0x1570   :  { %4131 = vmatpush3.bf16.msra.mxu1 %v4130_v46 }
0x1571   :  { %4138 = vmatprep.subr.bf16.mxu1 %v4450_v55 }
0x1573   :  { %3871 = vmatmul.mubr.msk.f32.vlgmr.msra.gmra.mrb[50].mxu1 %vm326_vm4, %v2759_v21 }
0x1574   :  { %3892 = vmatprep.mubr.msk.f32.mxu1 %vm4451_vm3, %v4452_v61  ;;  %4140 = vmatpush3.bf16.msra.mxu1 %v4139_v60 }
0x1575   :  { %4141 = vmatprep.subr.bf16.mxu1 %v4450_v55  ;;  %v3003_v55 = vld [vmem:[%s5528_s26 + $0x8] sm:$0xff]  ;;  %s4408_s26 = scalar_lea.vmem %s3093_s16, 32 }
0x1576   :  { %v4145_v36 = vpack.c.bf16 %v3003_v55, %v3002_v10  ;;  %p4409_p6 = scmp.ne.s32.totalorder %s3093_s16, %s4408_s26  ;;  %p4414_p8 = scmp.lt.s32.totalorder %s4408_s26, %s4408_s26 }
0x1578   :  { %4143 = vmatpush3.bf16.msra.mxu1 %v4142_v59  ;;  %p4415_p9 = por %p4414_p8, %p4413_p7 }
0x157a   :  { %p4416_p10 = pnand %p4415_p9, %p4409_p6 }
0x1646   :  { %v2829_v19 = vpop.f32.mrb[50].mxu1 }
0x1647   :  { %v3872_v37 = vpop.f32.mrb[51].mxu1  ;;  %3882 = vmatmul.mubr.msk.f32.vlgmr.msra.gmra.mrb[34].mxu0 %vm279_vm2, %v2829_v19 }
0x1648   :  { %3899 = vmatprep.mubr.msk.f32.mxu0 %vm4451_vm3, %v4452_v61  ;;  %v3287_v61 = vld [vmem:[%s5525_s23] ss:$0 sm:$0xff]  ;;  %4146 = vmatpush3.bf16.msra.mxu0 %v4145_v36  ;;  %s5576_s23 = sld [smem:[#allocation32_spill]] }
0x164e   :  { %v3289_v57 = vld [vmem:[%s5576_s23] ss:$0 sm:$0xff] }
0x171a   :  { %v2913_v44 = vpop.f32.mrb[34].mxu0 }
0x171b   :  { %v2914_v58 = vadd.f32 %v3287_v61, %v2913_v44  ;;  %v3883_v63 = vpop.f32.mrb[35].mxu0 }
0x171d   :  { %4266 = vtanh.f32 %v2914_v58 }
0x1727   :  { %v4267_v45 = vpop.eup %4266 }
0x1728   :  { %3893 = vmatmul.mubr.msk.f32.vlgmr.msra.gmra.mrb[52].mxu1 %vm279_vm2, %v4267_v45 }
0x17fb   :  { %v2998_v39 = vpop.f32.mrb[52].mxu1 }
0x17fc   :  { %v2999_v11 = vadd.f32 %v3289_v57, %v2998_v39  ;;  %v3894_v47 = vpop.f32.mrb[53].mxu1 }
0x17fe   :  { %3900 = vmatmul.mubr.msk.f32.vlgmr.msra.gmra.mrb[36].mxu0 %vm326_vm4, %v2999_v11 }
0x18d1   :  { %v3080_v25 = vpop.f32.mrb[36].mxu0 }
0x18d2   :  { %v3081_v52 = vadd.f32 %v3291_v23, %v3080_v25  ;;  %v3901_v34 = vpop.f32.mrb[37].mxu0 }
0x18d4   :  { %3085 = vst.msk [vmem:[#allocation13] sm:$0x3] %vm3084_vm8, %v3081_v52 }
0x18d5   :  { %4419 = shalt.err (!%p4416_p10)
}
0x18d6   :  { %s5578_s14 = sld [smem:[#allocation34_spill]] }
0x18dc   :  { %s4420_s27 = scalar_lea.hbm %s5578_s14, 32 }
0x18dd   :  { %p4421_p11 = scmp.ne.s32.totalorder %s5578_s14, %s4420_s27  ;;  %p4424_p12 = scmp.lt.u32.totalorder %s4420_s27, %s5578_s14 }
0x18df   :  { %p4426_p13 = pnand %p4424_p12, %p4421_p11 }
0x18e1   :  { %4429 = shalt.err (!%p4426_p13)
}
0x18e2   :  { %3095 = dma.vmem_to_hbm [thread:$0]  %s3093_s16, 32, %s5578_s14, [#allocation4]  }
0x18e3   :  { %4438 = dma.done.wait [#allocation4], 32  }
0x18e4   :  { %4439 = vsyncadd [#allocation4], 4294967264 }
0x18e5   :  { %3099 = vsyncpa [#allocation3], 1 }
0x18e6   :  { %3100 = vsyncpa [#allocation6], 1 }
0x18e7   :  { %3101 = vsyncpa [#allocation9], 1 }
0x18e8   :  { %3102 = vsyncpa [#allocation12], 1 }
0x18e9   :  { %3103 = vsyncpa [#allocation4], 1 }

</bundles_post_ra>
